<compile_context>
chip_gen: v6e
topology: v6e:2x2x1
jax: 0.10.0
libtpu: 0.0.40
codegen_flags: <defaults>
</compile_context>

<pallas_src>
import jax
import jax.numpy as jnp
from jax.experimental import pallas as pl
from jax.experimental.pallas import tpu as pltpu


def _conv3x3_relu(xp_ref, w_ref, b_ref, Hs, Ws):
    """3x3 'same' conv (input pre-padded in VMEM) as one im2col matmul,
    + bias (BN already folded into w/b) + ReLU.  Returns (Hs*Ws, Cout) f32."""
    Cin = xp_ref.shape[-1]
    # 9 shifted views concatenated along the lane dim -> (Hs*Ws, 9*Cin).
    cols = [xp_ref[kh:kh + Hs, kw:kw + Ws, :].reshape(Hs * Ws, Cin)
            for kh in range(3) for kw in range(3)]
    patches = jnp.concatenate(cols, axis=-1).astype(w_ref.dtype)   # bf16 for MXU
    acc = jnp.dot(patches, w_ref[...], preferred_element_type=jnp.float32)
    return jnp.maximum(acc + b_ref[...], 0.0)


def _encoder_block_kernel(x_ref, w0_ref, b0_ref, w1_ref, b1_ref, o_ref,
                          sp_ref, xp0_ref, xp1_ref):
    # x_ref : (1, H, W, Cin)        w0_ref: (9*Cin, C0)  b0_ref: (1, C0)
    # o_ref : (1, H/2, W/2, C1)     w1_ref: (9*C0, C1)   b1_ref: (1, C1)
    # sp_ref: (H/2, W, Cin)  xp0_ref: (H/2+2, W/2+2, Cin)  xp1_ref: (H/2+2, W/2+2, C0)
    _, H2, W2, C1 = o_ref.shape
    W = x_ref.shape[2]
    Cin = x_ref.shape[3]
    C0 = xp1_ref.shape[-1]

    # ---- 2x2 max-pool, stride 2 (all in VMEM; no wrapper reshape/pad) ------
    # H-pair max: split the (non-tiled) H dim and reduce it.
    sp_ref[...] = jnp.max(x_ref[0].reshape(H2, 2, W, Cin), axis=1)     # (H2, W, Cin)

    # ---- conv0 + folded BN + ReLU ------------------------------------------
    xp0_ref[...] = jnp.zeros_like(xp0_ref)          # zero border = 'same' padding
    # W-pair max via strided sublane reads, written straight into the interior.
    xp0_ref[1:H2 + 1, 1:W2 + 1, :] = jnp.maximum(
        sp_ref[:, pl.ds(0, W2, stride=2), :],
        sp_ref[:, pl.ds(1, W2, stride=2), :])                           # (H2, W2, Cin)
    y0 = _conv3x3_relu(xp0_ref, w0_ref, b0_ref, H2, W2)                 # (H2*W2, C0)

    # ---- conv1 + folded BN + ReLU ------------------------------------------
    xp1_ref[...] = jnp.zeros_like(xp1_ref)
    xp1_ref[1:H2 + 1, 1:W2 + 1, :] = y0.reshape(H2, W2, C0)
    y1 = _conv3x3_relu(xp1_ref, w1_ref, b1_ref, H2, W2)                 # (H2*W2, C1)

    o_ref[0] = y1.reshape(H2, W2, C1).astype(o_ref.dtype)


def encoder_block(x_nchw, p0, p1):
    """NCHW in -> NCHW out, matching EncoderBlock.forward (eval-mode BN)."""
    N, Cin, H, W = x_nchw.shape
    H2, W2 = H // 2, W // 2
    C0 = p0["w_mat"].shape[-1]
    C1 = p1["w_mat"].shape[-1]

    x = jnp.transpose(x_nchw, (0, 2, 3, 1))                 # NCHW -> NHWC (glue)

    out_nhwc = pl.pallas_call(
        _encoder_block_kernel,
        out_shape=jax.ShapeDtypeStruct((N, H2, W2, C1), x.dtype),
        grid=(N,),
        in_specs=[
            pl.BlockSpec((1, H, W, Cin), lambda n: (n, 0, 0, 0)),
            pl.BlockSpec((9 * Cin, C0), lambda n: (0, 0)),   # resident every step
            pl.BlockSpec((1, C0), lambda n: (0, 0)),
            pl.BlockSpec((9 * C0, C1), lambda n: (0, 0)),
            pl.BlockSpec((1, C1), lambda n: (0, 0)),
        ],
        out_specs=pl.BlockSpec((1, H2, W2, C1), lambda n: (n, 0, 0, 0)),
        scratch_shapes=[
            pltpu.VMEM((H2, W, Cin), jnp.float32),            # pool stage-1
            pltpu.VMEM((H2 + 2, W2 + 2, Cin), jnp.float32),   # padded conv0 input
            pltpu.VMEM((H2 + 2, W2 + 2, C0), jnp.float32),    # padded conv1 input
        ],
        compiler_params=pltpu.CompilerParams(
            dimension_semantics=("parallel",)),               # v7x: 2 TCs split batch
    )(x, p0["w_mat"], p0["b_vec"], p1["w_mat"], p1["b_vec"])

    return jnp.transpose(out_nhwc, (0, 3, 1, 2))             # NHWC -> NCHW (glue)


encoder_block = jax.jit(encoder_block)


# ----------------------------------------------------------------------------
# Parameter construction: deterministic, BatchNorm (eval) folded as
#   scale = gamma / sqrt(var + eps)
#   bias  = beta + scale * (conv_bias - running_mean)
# and the scale folded into the conv weights (review item: drop the in-kernel
# VPU multiply).  Kernel weights are pre-reshaped to (9*Cin, Cout) bf16.
# ----------------------------------------------------------------------------
def make_conv_bn_params(key, cin, cout, eps=1e-5):
    k = jax.random.split(key, 6)
    w = 0.1 * jax.random.normal(k[0], (3, 3, cin, cout), jnp.float32)   # HWIO
    b = 0.1 * jax.random.normal(k[1], (cout,), jnp.float32)
    gamma = 1.0 + 0.1 * jax.random.normal(k[2], (cout,), jnp.float32)
    beta = 0.1 * jax.random.normal(k[3], (cout,), jnp.float32)
    running_mean = 0.05 * jax.random.normal(k[4], (cout,), jnp.float32)
    running_var = 1.0 + 0.1 * jnp.abs(jax.random.normal(k[5], (cout,), jnp.float32))

    scale = gamma / jnp.sqrt(running_var + eps)
    bias = beta + scale * (b - running_mean)
    w_folded = (w * scale[None, None, None, :]).reshape(9 * cin, cout)

    return {
        # reference (module-semantics) form
        "w": w, "scale": scale, "bias": bias,
        # kernel form: BN folded into weights, im2col layout, bf16 MXU inputs
        "w_mat": w_folded.astype(jnp.bfloat16),
        "b_vec": bias.reshape(1, cout),
    }


# ----------------------------------------------------------------------------
# Pure-JAX reference (f32) for validation
# ----------------------------------------------------------------------------
def ref_forward(x_nchw, p0, p1):
    x = jnp.transpose(x_nchw, (0, 2, 3, 1))
    N, H, W, C = x.shape
    x = jnp.max(x.reshape(N, H // 2, 2, W // 2, 2, C), axis=(2, 4))
    for p in (p0, p1):
        y = jax.lax.conv_general_dilated(
            x, p["w"], window_strides=(1, 1), padding="SAME",
            dimension_numbers=("NHWC", "HWIO", "NHWC"))
        x = jnp.maximum(y * p["scale"] + p["bias"], 0.0)
    return jnp.transpose(x, (0, 3, 1, 2))


if __name__ == "__main__":
    key = jax.random.PRNGKey(0)
    kx, k0, k1 = jax.random.split(key, 3)

    N, Cin, H, W = 2, 4, 16, 16
    Cout = 8
    x = jax.random.normal(kx, (N, Cin, H, W), jnp.float32)

    p0 = make_conv_bn_params(k0, Cin, Cout)
    p1 = make_conv_bn_params(k1, Cout, Cout)

    out = jax.block_until_ready(encoder_block(x, p0, p1))
    ref = jax.block_until_ready(ref_forward(x, p0, p1))

    assert out.shape == (N, Cout, H // 2, W // 2), out.shape
    # Tolerance loosened vs. the f32 reference because MXU inputs are bf16
    # (accumulation stays f32); observed error is well inside this bound.
    assert jnp.allclose(out, ref, atol=5e-2, rtol=5e-2), \
        float(jnp.max(jnp.abs(out - ref)))

    print("KERNEL_OK")
</pallas_src>

<mosaic_0001>
module attributes {stable_mosaic.version = 11 : i64} {
  func.func @_encoder_block_kernel(%arg0: i32, %arg1: memref<1x16x16x4xf32, #tpu.memory_space<vmem>>, %arg2: memref<36x8xbf16, #tpu.memory_space<vmem>>, %arg3: memref<1x8xf32, #tpu.memory_space<vmem>>, %arg4: memref<72x8xbf16, #tpu.memory_space<vmem>>, %arg5: memref<1x8xf32, #tpu.memory_space<vmem>>, %arg6: memref<1x8x8x8xf32, #tpu.memory_space<vmem>>, %arg7: memref<8x16x4xf32, #tpu.memory_space<vmem>>, %arg8: memref<10x10x4xf32, #tpu.memory_space<vmem>>, %arg9: memref<10x10x8xf32, #tpu.memory_space<vmem>>) attributes {dimension_semantics = [#tpu.dimension_semantics<parallel>], iteration_bounds = array<i64: 2>, scalar_prefetch = 0 : i64, scratch_operands = 3 : i64, tpu.core_type = #tpu.core_type<tc>, window_params = [{transform_indices = @transform_0, window_bounds = array<i64: 1, 16, 16, 4>}, {pipeline_mode = #tpu.pipeline_mode<synchronous>, transform_indices = @transform_1, window_bounds = array<i64: 36, 8>}, {pipeline_mode = #tpu.pipeline_mode<synchronous>, transform_indices = @transform_2, window_bounds = array<i64: 1, 8>}, {pipeline_mode = #tpu.pipeline_mode<synchronous>, transform_indices = @transform_3, window_bounds = array<i64: 72, 8>}, {pipeline_mode = #tpu.pipeline_mode<synchronous>, transform_indices = @transform_4, window_bounds = array<i64: 1, 8>}, {transform_indices = @transform_5, window_bounds = array<i64: 1, 8, 8, 8>}]} {
    %c0 = arith.constant 0 : index
    %c0_0 = arith.constant 0 : index
    %c0_1 = arith.constant 0 : index
    %c0_2 = arith.constant 0 : index
    %0 = vector.load %arg1[%c0, %c0_0, %c0_1, %c0_2] : memref<1x16x16x4xf32, #tpu.memory_space<vmem>>, vector<1x16x16x4xf32>
    %1 = vector.shape_cast %0 : vector<1x16x16x4xf32> to vector<16x16x4xf32>
    %2 = vector.shape_cast %1 : vector<16x16x4xf32> to vector<8x2x16x4xf32>
    %cst = arith.constant dense<0xFF800000> : vector<8x16x4xf32>
    %3 = vector.multi_reduction <maximumf>, %2, %cst [1] : vector<8x2x16x4xf32> to vector<8x16x4xf32>
    %c0_3 = arith.constant 0 : index
    %c0_4 = arith.constant 0 : index
    %c0_5 = arith.constant 0 : index
    %4 = vector.load %arg7[%c0_3, %c0_4, %c0_5] : memref<8x16x4xf32, #tpu.memory_space<vmem>>, vector<8x16x4xf32>
    tpu.vector_store %arg7[%c0_3, %c0_4, %c0_5], %3 {strides = array<i32>} : memref<8x16x4xf32, #tpu.memory_space<vmem>>, vector<8x16x4xf32>,
    %cst_6 = arith.constant 0.000000e+00 : f32
    %5 = vector.broadcast %cst_6 : f32 to vector<10x10x4xf32>
    %c0_7 = arith.constant 0 : index
    %c0_8 = arith.constant 0 : index
    %c0_9 = arith.constant 0 : index
    %6 = vector.load %arg8[%c0_7, %c0_8, %c0_9] : memref<10x10x4xf32, #tpu.memory_space<vmem>>, vector<10x10x4xf32>
    tpu.vector_store %arg8[%c0_7, %c0_8, %c0_9], %5 {strides = array<i32>} : memref<10x10x4xf32, #tpu.memory_space<vmem>>, vector<10x10x4xf32>,
    %c0_10 = arith.constant 0 : index
    %c0_11 = arith.constant 0 : index
    %c0_12 = arith.constant 0 : index
    %7 = tpu.strided_load %arg7[%c0_10, %c0_11, %c0_12] {strides = array<i32: 1, 2, 1>} : memref<8x16x4xf32, #tpu.memory_space<vmem>>, vector<8x8x4xf32>
    %c0_13 = arith.constant 0 : index
    %c1 = arith.constant 1 : index
    %c0_14 = arith.constant 0 : index
    %8 = tpu.strided_load %arg7[%c0_13, %c1, %c0_14] {strides = array<i32: 1, 2, 1>} : memref<8x16x4xf32, #tpu.memory_space<vmem>>, vector<8x8x4xf32>
    %9 = arith.maximumf %7, %8 : vector<8x8x4xf32>
    %c1_15 = arith.constant 1 : index
    %c1_16 = arith.constant 1 : index
    %c0_17 = arith.constant 0 : index
    %10 = vector.load %arg8[%c1_15, %c1_16, %c0_17] : memref<10x10x4xf32, #tpu.memory_space<vmem>>, vector<8x8x4xf32>
    tpu.vector_store %arg8[%c1_15, %c1_16, %c0_17], %9 {strides = array<i32>} : memref<10x10x4xf32, #tpu.memory_space<vmem>>, vector<8x8x4xf32>,
    %c0_18 = arith.constant 0 : index
    %c0_19 = arith.constant 0 : index
    %c0_20 = arith.constant 0 : index
    %11 = vector.load %arg8[%c0_18, %c0_19, %c0_20] : memref<10x10x4xf32, #tpu.memory_space<vmem>>, vector<8x8x4xf32>
    %12 = vector.shape_cast %11 : vector<8x8x4xf32> to vector<64x4xf32>
    %c0_21 = arith.constant 0 : index
    %c1_22 = arith.constant 1 : index
    %c0_23 = arith.constant 0 : index
    %13 = vector.load %arg8[%c0_21, %c1_22, %c0_23] : memref<10x10x4xf32, #tpu.memory_space<vmem>>, vector<8x8x4xf32>
    %14 = vector.shape_cast %13 : vector<8x8x4xf32> to vector<64x4xf32>
    %c0_24 = arith.constant 0 : index
    %c2 = arith.constant 2 : index
    %c0_25 = arith.constant 0 : index
    %15 = vector.load %arg8[%c0_24, %c2, %c0_25] : memref<10x10x4xf32, #tpu.memory_space<vmem>>, vector<8x8x4xf32>
    %16 = vector.shape_cast %15 : vector<8x8x4xf32> to vector<64x4xf32>
    %c1_26 = arith.constant 1 : index
    %c0_27 = arith.constant 0 : index
    %c0_28 = arith.constant 0 : index
    %17 = vector.load %arg8[%c1_26, %c0_27, %c0_28] : memref<10x10x4xf32, #tpu.memory_space<vmem>>, vector<8x8x4xf32>
    %18 = vector.shape_cast %17 : vector<8x8x4xf32> to vector<64x4xf32>
    %c1_29 = arith.constant 1 : index
    %c1_30 = arith.constant 1 : index
    %c0_31 = arith.constant 0 : index
    %19 = vector.load %arg8[%c1_29, %c1_30, %c0_31] : memref<10x10x4xf32, #tpu.memory_space<vmem>>, vector<8x8x4xf32>
    %20 = vector.shape_cast %19 : vector<8x8x4xf32> to vector<64x4xf32>
    %c1_32 = arith.constant 1 : index
    %c2_33 = arith.constant 2 : index
    %c0_34 = arith.constant 0 : index
    %21 = vector.load %arg8[%c1_32, %c2_33, %c0_34] : memref<10x10x4xf32, #tpu.memory_space<vmem>>, vector<8x8x4xf32>
    %22 = vector.shape_cast %21 : vector<8x8x4xf32> to vector<64x4xf32>
    %c2_35 = arith.constant 2 : index
    %c0_36 = arith.constant 0 : index
    %c0_37 = arith.constant 0 : index
    %23 = vector.load %arg8[%c2_35, %c0_36, %c0_37] : memref<10x10x4xf32, #tpu.memory_space<vmem>>, vector<8x8x4xf32>
    %24 = vector.shape_cast %23 : vector<8x8x4xf32> to vector<64x4xf32>
    %c2_38 = arith.constant 2 : index
    %c1_39 = arith.constant 1 : index
    %c0_40 = arith.constant 0 : index
    %25 = vector.load %arg8[%c2_38, %c1_39, %c0_40] : memref<10x10x4xf32, #tpu.memory_space<vmem>>, vector<8x8x4xf32>
    %26 = vector.shape_cast %25 : vector<8x8x4xf32> to vector<64x4xf32>
    %c2_41 = arith.constant 2 : index
    %c2_42 = arith.constant 2 : index
    %c0_43 = arith.constant 0 : index
    %27 = vector.load %arg8[%c2_41, %c2_42, %c0_43] : memref<10x10x4xf32, #tpu.memory_space<vmem>>, vector<8x8x4xf32>
    %28 = vector.shape_cast %27 : vector<8x8x4xf32> to vector<64x4xf32>
    %29 = tpu.concatenate %12, %14, %16, %18, %20, %22, %24, %26, %28 in 1 : vector<64x4xf32>, vector<64x4xf32>, vector<64x4xf32>, vector<64x4xf32>, vector<64x4xf32>, vector<64x4xf32>, vector<64x4xf32>, vector<64x4xf32>, vector<64x4xf32> -> vector<64x36xf32>
    %30 = arith.truncf %29 : vector<64x36xf32> to vector<64x36xbf16>
    %c0_44 = arith.constant 0 : index
    %c0_45 = arith.constant 0 : index
    %31 = vector.load %arg2[%c0_44, %c0_45] : memref<36x8xbf16, #tpu.memory_space<vmem>>, vector<36x8xbf16>
    %cst_46 = arith.constant dense<0.000000e+00> : vector<64x8xf32>
    %32 = tpu.matmul %30, %31, %cst_46 {dimension_numbers = #tpu.dot_dimension_numbers<[1], [0], [0], [1], [0, 0, 1, 1], [], []>} : vector<64x36xbf16>, vector<36x8xbf16>, vector<64x8xf32> -> vector<64x8xf32>
    %c0_47 = arith.constant 0 : index
    %c0_48 = arith.constant 0 : index
    %33 = vector.load %arg3[%c0_47, %c0_48] : memref<1x8xf32, #tpu.memory_space<vmem>>, vector<1x8xf32>
    %34 = vector.broadcast %33 : vector<1x8xf32> to vector<64x8xf32>
    %35 = arith.addf %32, %34 : vector<64x8xf32>
    %cst_49 = arith.constant 0.000000e+00 : f32
    %36 = vector.broadcast %cst_49 : f32 to vector<64x8xf32>
    %37 = arith.maximumf %35, %36 : vector<64x8xf32>
    %cst_50 = arith.constant 0.000000e+00 : f32
    %38 = vector.broadcast %cst_50 : f32 to vector<10x10x8xf32>
    %c0_51 = arith.constant 0 : index
    %c0_52 = arith.constant 0 : index
    %c0_53 = arith.constant 0 : index
    %39 = vector.load %arg9[%c0_51, %c0_52, %c0_53] : memref<10x10x8xf32, #tpu.memory_space<vmem>>, vector<10x10x8xf32>
    tpu.vector_store %arg9[%c0_51, %c0_52, %c0_53], %38 {strides = array<i32>} : memref<10x10x8xf32, #tpu.memory_space<vmem>>, vector<10x10x8xf32>,
    %40 = vector.shape_cast %37 : vector<64x8xf32> to vector<8x8x8xf32>
    %c1_54 = arith.constant 1 : index
    %c1_55 = arith.constant 1 : index
    %c0_56 = arith.constant 0 : index
    %41 = vector.load %arg9[%c1_54, %c1_55, %c0_56] : memref<10x10x8xf32, #tpu.memory_space<vmem>>, vector<8x8x8xf32>
    tpu.vector_store %arg9[%c1_54, %c1_55, %c0_56], %40 {strides = array<i32>} : memref<10x10x8xf32, #tpu.memory_space<vmem>>, vector<8x8x8xf32>,
    %c0_57 = arith.constant 0 : index
    %c0_58 = arith.constant 0 : index
    %c0_59 = arith.constant 0 : index
    %42 = vector.load %arg9[%c0_57, %c0_58, %c0_59] : memref<10x10x8xf32, #tpu.memory_space<vmem>>, vector<8x8x8xf32>
    %43 = vector.shape_cast %42 : vector<8x8x8xf32> to vector<64x8xf32>
    %c0_60 = arith.constant 0 : index
    %c1_61 = arith.constant 1 : index
    %c0_62 = arith.constant 0 : index
    %44 = vector.load %arg9[%c0_60, %c1_61, %c0_62] : memref<10x10x8xf32, #tpu.memory_space<vmem>>, vector<8x8x8xf32>
    %45 = vector.shape_cast %44 : vector<8x8x8xf32> to vector<64x8xf32>
    %c0_63 = arith.constant 0 : index
    %c2_64 = arith.constant 2 : index
    %c0_65 = arith.constant 0 : index
    %46 = vector.load %arg9[%c0_63, %c2_64, %c0_65] : memref<10x10x8xf32, #tpu.memory_space<vmem>>, vector<8x8x8xf32>
    %47 = vector.shape_cast %46 : vector<8x8x8xf32> to vector<64x8xf32>
    %c1_66 = arith.constant 1 : index
    %c0_67 = arith.constant 0 : index
    %c0_68 = arith.constant 0 : index
    %48 = vector.load %arg9[%c1_66, %c0_67, %c0_68] : memref<10x10x8xf32, #tpu.memory_space<vmem>>, vector<8x8x8xf32>
    %49 = vector.shape_cast %48 : vector<8x8x8xf32> to vector<64x8xf32>
    %c1_69 = arith.constant 1 : index
    %c1_70 = arith.constant 1 : index
    %c0_71 = arith.constant 0 : index
    %50 = vector.load %arg9[%c1_69, %c1_70, %c0_71] : memref<10x10x8xf32, #tpu.memory_space<vmem>>, vector<8x8x8xf32>
    %51 = vector.shape_cast %50 : vector<8x8x8xf32> to vector<64x8xf32>
    %c1_72 = arith.constant 1 : index
    %c2_73 = arith.constant 2 : index
    %c0_74 = arith.constant 0 : index
    %52 = vector.load %arg9[%c1_72, %c2_73, %c0_74] : memref<10x10x8xf32, #tpu.memory_space<vmem>>, vector<8x8x8xf32>
    %53 = vector.shape_cast %52 : vector<8x8x8xf32> to vector<64x8xf32>
    %c2_75 = arith.constant 2 : index
    %c0_76 = arith.constant 0 : index
    %c0_77 = arith.constant 0 : index
    %54 = vector.load %arg9[%c2_75, %c0_76, %c0_77] : memref<10x10x8xf32, #tpu.memory_space<vmem>>, vector<8x8x8xf32>
    %55 = vector.shape_cast %54 : vector<8x8x8xf32> to vector<64x8xf32>
    %c2_78 = arith.constant 2 : index
    %c1_79 = arith.constant 1 : index
    %c0_80 = arith.constant 0 : index
    %56 = vector.load %arg9[%c2_78, %c1_79, %c0_80] : memref<10x10x8xf32, #tpu.memory_space<vmem>>, vector<8x8x8xf32>
    %57 = vector.shape_cast %56 : vector<8x8x8xf32> to vector<64x8xf32>
    %c2_81 = arith.constant 2 : index
    %c2_82 = arith.constant 2 : index
    %c0_83 = arith.constant 0 : index
    %58 = vector.load %arg9[%c2_81, %c2_82, %c0_83] : memref<10x10x8xf32, #tpu.memory_space<vmem>>, vector<8x8x8xf32>
    %59 = vector.shape_cast %58 : vector<8x8x8xf32> to vector<64x8xf32>
    %60 = tpu.concatenate %43, %45, %47, %49, %51, %53, %55, %57, %59 in 1 : vector<64x8xf32>, vector<64x8xf32>, vector<64x8xf32>, vector<64x8xf32>, vector<64x8xf32>, vector<64x8xf32>, vector<64x8xf32>, vector<64x8xf32>, vector<64x8xf32> -> vector<64x72xf32>
    %61 = arith.truncf %60 : vector<64x72xf32> to vector<64x72xbf16>
    %c0_84 = arith.constant 0 : index
    %c0_85 = arith.constant 0 : index
    %62 = vector.load %arg4[%c0_84, %c0_85] : memref<72x8xbf16, #tpu.memory_space<vmem>>, vector<72x8xbf16>
    %cst_86 = arith.constant dense<0.000000e+00> : vector<64x8xf32>
    %63 = tpu.matmul %61, %62, %cst_86 {dimension_numbers = #tpu.dot_dimension_numbers<[1], [0], [0], [1], [0, 0, 1, 1], [], []>} : vector<64x72xbf16>, vector<72x8xbf16>, vector<64x8xf32> -> vector<64x8xf32>
    %c0_87 = arith.constant 0 : index
    %c0_88 = arith.constant 0 : index
    %64 = vector.load %arg5[%c0_87, %c0_88] : memref<1x8xf32, #tpu.memory_space<vmem>>, vector<1x8xf32>
    %65 = vector.broadcast %64 : vector<1x8xf32> to vector<64x8xf32>
    %66 = arith.addf %63, %65 : vector<64x8xf32>
    %cst_89 = arith.constant 0.000000e+00 : f32
    %67 = vector.broadcast %cst_89 : f32 to vector<64x8xf32>
    %68 = arith.maximumf %66, %67 : vector<64x8xf32>
    %69 = vector.shape_cast %68 : vector<64x8xf32> to vector<8x8x8xf32>
    %c0_90 = arith.constant 0 : index
    %c0_91 = arith.constant 0 : index
    %c0_92 = arith.constant 0 : index
    %c0_93 = arith.constant 0 : index
    %70 = vector.load %arg6[%c0_90, %c0_91, %c0_92, %c0_93] : memref<1x8x8x8xf32, #tpu.memory_space<vmem>>, vector<1x8x8x8xf32>
    %71 = vector.shape_cast %70 : vector<1x8x8x8xf32> to vector<8x8x8xf32>
    %72 = vector.shape_cast %69 : vector<8x8x8xf32> to vector<1x8x8x8xf32>
    tpu.vector_store %arg6[%c0_90, %c0_91, %c0_92, %c0_93], %72 {strides = array<i32>} : memref<1x8x8x8xf32, #tpu.memory_space<vmem>>, vector<1x8x8x8xf32>,
    return
  }
  func.func @transform_0(%arg0: i32) -> (i32, i32, i32, i32) {
    %c0_i32 = arith.constant 0 : i32
    %c0_i32_0 = arith.constant 0 : i32
    %c0_i32_1 = arith.constant 0 : i32
    %c0_i32_2 = arith.constant 0 : i32
    return %arg0, %c0_i32, %c0_i32_0, %c0_i32_1 : i32, i32, i32, i32
  }
  func.func @transform_1(%arg0: i32) -> (i32, i32) {
    %c0_i32 = arith.constant 0 : i32
    %c0_i32_0 = arith.constant 0 : i32
    %c0_i32_1 = arith.constant 0 : i32
    return %c0_i32, %c0_i32_0 : i32, i32
  }
  func.func @transform_2(%arg0: i32) -> (i32, i32) {
    %c0_i32 = arith.constant 0 : i32
    %c0_i32_0 = arith.constant 0 : i32
    %c0_i32_1 = arith.constant 0 : i32
    return %c0_i32, %c0_i32_0 : i32, i32
  }
  func.func @transform_3(%arg0: i32) -> (i32, i32) {
    %c0_i32 = arith.constant 0 : i32
    %c0_i32_0 = arith.constant 0 : i32
    %c0_i32_1 = arith.constant 0 : i32
    return %c0_i32, %c0_i32_0 : i32, i32
  }
  func.func @transform_4(%arg0: i32) -> (i32, i32) {
    %c0_i32 = arith.constant 0 : i32
    %c0_i32_0 = arith.constant 0 : i32
    %c0_i32_1 = arith.constant 0 : i32
    return %c0_i32, %c0_i32_0 : i32, i32
  }
  func.func @transform_5(%arg0: i32) -> (i32, i32, i32, i32) {
    %c0_i32 = arith.constant 0 : i32
    %c0_i32_0 = arith.constant 0 : i32
    %c0_i32_1 = arith.constant 0 : i32
    %c0_i32_2 = arith.constant 0 : i32
    return %arg0, %c0_i32, %c0_i32_0, %c0_i32_1 : i32, i32, i32, i32
  }
}

</mosaic_0001>

<bundles_post_ra>
// kernel: encoder_block.1
= control target key start
LH: loop header
LB: loop body
LE: loop exit
PB: predicated region body
PF: predicated region fallthrough
CT: control target
= control target key end

     0   :  { %s2021_s18 = smov 0   ;;  %s2560_s0 = inlined_call_operand.vmem [shape: f32[2,16,16,4], index: 0, kind: input, shape index: {}]   ;;  %s2561_s1 = inlined_call_operand.vmem [shape: bf16[36,8], index: 1, kind: input, shape index: {}]   ;;  %s2562_s2 = inlined_call_operand.vmem [shape: f32[1,8], index: 2, kind: input, shape index: {}]   ;;  %s2563_s3 = inlined_call_operand.vmem [shape: bf16[72,8], index: 3, kind: input, shape index: {}]   ;;  %s2564_s4 = inlined_call_operand.vmem [shape: f32[1,8], index: 4, kind: input, shape index: {}]   ;;  %s2565_s5 = inlined_call_operand.vmem [shape: f32[2,8,8,8], index: 5, kind: output, shape index: {}]  }
   0x1 LB: > { %s1540_s19 = sadd.s32 4294967295, %s1976_s18   ;;  %p1544_p0 = scmp.ge.s32.totalorder %s1976_s18, 1  ;;  %s1976_s18 = sphi %s2021_s18, %s15_s18  }
   0x2   : > { %p187_p1 = scmp.lt.s32.totalorder %s1976_s18, 3 }
   0x4   : > { %p188_p2 = pnand %p1544_p0, %p187_p1 }
   0x5   : > { %p2029_p3 = scmp.lt.s32.totalorder (!%p188_p2), %s1540_s19, 1  ;;  %s1979_s25 = smov (!%p188_p2), 8  }
   0x6   : > { %191 = sbr.rel (%p188_p2) target bundleno = 801 (0x321), region = 40  ;;  %s1980_s26 = smov (!%p188_p2), 4  }
   0x7   : > { %s1981_s27 = smov (!%p188_p2), 12   ;;  %s1982_s30 = smov (!%p188_p2), 16  }
   0x8   : > { %s1983_s8 = smov (!%p188_p2), 20   ;;  %s1984_s11 = smov (!%p188_p2), 24  }
   0x9   : > { %s1985_s12 = smov (!%p188_p2), 28   ;;  %s1986_s13 = smov (!%p188_p2), 32  }
   0xa   : > { %s1987_s22 = smov (!%p188_p2), 40   ;;  %s1988_s28 = smov (!%p188_p2), 48  }
   0xb   : > { %vm258_vm0 = vcmask 31744   ;;  %vm324_vm1 = vcmask 25600   ;;  %v1978_v0 = vmov 0.0   ;;  %s2568_s19 = smov (!%p2029_p3, %s1540_s19), 1  ;;  %vm729_vm2 = vcmask 64512   ;;  %s1989_s7 = smov 56  }
   0xc   : > { %323 = vst.msk [vmem:[#allocation3] sm:$0xff] %vm258_vm0, %v1978_v0  ;;  %326 = vst.msk [vmem:[#allocation3 + $0x10] sm:$0xff] %vm258_vm0, %v1978_v0  ;;  %s1569_s21 = sshll.u32 %s2568_s19, 8  ;;  %vm836_vm3 = vcmask 1041408   ;;  %vm738_vm4 = vcmask 97280   ;;  %vm747_vm5 = vcmask 130048  }
   0xd   : > { %325 = vst.msk [vmem:[#allocation3 + $0x8] sm:$0x3] %vm324_vm1, %v1978_v0  ;;  %327 = vst.msk [vmem:[#allocation3 + $0x18] sm:$0x3] %vm324_vm1, %v1978_v0  ;;  %s2081_s24 = scalar_lea.vmem %s2560_s0, %s1569_s21  ;;  %vm756_vm6 = vcmask 162816   ;;  %vm765_vm7 = vcmask 195584  }
   0xe   : > { %328 = vst.msk [vmem:[#allocation3 + $0x20] sm:$0xff] %vm258_vm0, %v1978_v0  ;;  %330 = vst.msk [vmem:[#allocation3 + $0x30] sm:$0xff] %vm258_vm0, %v1978_v0  ;;  %v226_v1 = vld [vmem:[%s2081_s24] sm:$0xff]  ;;  %v227_v2 = vld [vmem:[%s2081_s24 + $0x8] sm:$0xff]  ;;  %vm774_vm8 = vcmask 228352   ;;  %vm783_vm9 = vcmask 261120  }
   0xf   : > { %329 = vst.msk [vmem:[#allocation3 + $0x28] sm:$0x3] %vm324_vm1, %v1978_v0  ;;  %331 = vst.msk [vmem:[#allocation3 + $0x38] sm:$0x3] %vm324_vm1, %v1978_v0  ;;  %v228_v3 = vld [vmem:[%s2081_s24 + $0x10] sm:$0xff]  ;;  %v229_v4 = vld [vmem:[%s2081_s24 + $0x18] sm:$0xff] }
  0x10   : > { %332 = vst.msk [vmem:[#allocation3 + $0x40] sm:$0xff] %vm258_vm0, %v1978_v0  ;;  %334 = vst.msk [vmem:[#allocation3 + $0x50] sm:$0xff] %vm258_vm0, %v1978_v0  ;;  %v259_v5 = vsel %vm258_vm0, %v226_v1, -inf  ;;  %v260_v6 = vsel %vm258_vm0, %v228_v3, -inf  ;;  %v262_v7 = vsel %vm258_vm0, %v227_v2, -inf  ;;  %v230_v8 = vld [vmem:[%s2081_s24 + $0x20] sm:$0xff] }
  0x11   : > { %333 = vst.msk [vmem:[#allocation3 + $0x48] sm:$0x3] %vm324_vm1, %v1978_v0  ;;  %335 = vst.msk [vmem:[#allocation3 + $0x58] sm:$0x3] %vm324_vm1, %v1978_v0  ;;  %v231_v9 = vld [vmem:[%s2081_s24 + $0x28] sm:$0xff]  ;;  %v261_v10 = vmax.f32 %v259_v5, %v260_v6  ;;  %v263_v11 = vsel %vm258_vm0, %v229_v4, -inf }
  0x12   : > { %336 = vst.msk [vmem:[#allocation3 + $0x60] sm:$0xff] %vm258_vm0, %v1978_v0  ;;  %338 = vst.msk [vmem:[#allocation3 + $0x70] sm:$0xff] %vm258_vm0, %v1978_v0  ;;  %v232_v12 = vld [vmem:[%s2081_s24 + $0x30] sm:$0xff]  ;;  %v265_v13 = vsel %vm258_vm0, %v230_v8, -inf  ;;  %v268_v14 = vsel %vm258_vm0, %v231_v9, -inf  ;;  %v264_v15 = vmax.f32 %v262_v7, %v263_v11  ;;  %v233_v16 = vld [vmem:[%s2081_s24 + $0x38] sm:$0xff] }
  0x13   : > { %337 = vst.msk [vmem:[#allocation3 + $0x68] sm:$0x3] %vm324_vm1, %v1978_v0  ;;  %339 = vst.msk [vmem:[#allocation3 + $0x78] sm:$0x3] %vm324_vm1, %v1978_v0  ;;  %v234_v17 = vld [vmem:[%s2081_s24 + $0x40] sm:$0xff]  ;;  %v235_v18 = vld [vmem:[%s2081_s24 + $0x48] sm:$0xff] }
  0x14   : > { %340 = vst.msk [vmem:[#allocation3 + $0x80] sm:$0xff] %vm258_vm0, %v1978_v0  ;;  %342 = vst.msk [vmem:[#allocation3 + $0x90] sm:$0xff] %vm258_vm0, %v1978_v0  ;;  %v266_v19 = vsel %vm258_vm0, %v232_v12, -inf  ;;  %v236_v20 = vld [vmem:[%s2081_s24 + $0x50] sm:$0xff]  ;;  %v237_v21 = vld [vmem:[%s2081_s24 + $0x58] sm:$0xff]  ;;  %v269_v23 = vsel %vm258_vm0, %v233_v16, -inf }
  0x15   : > { %341 = vst.msk [vmem:[#allocation3 + $0x88] sm:$0x3] %vm324_vm1, %v1978_v0  ;;  %343 = vst.msk [vmem:[#allocation3 + $0x98] sm:$0x3] %vm324_vm1, %v1978_v0  ;;  %v267_v22 = vmax.f32 %v265_v13, %v266_v19  ;;  %v271_v24 = vsel %vm258_vm0, %v234_v17, -inf  ;;  %v274_v25 = vsel %vm258_vm0, %v235_v18, -inf  ;;  %v270_v27 = vmax.f32 %v268_v14, %v269_v23 }
  0x16   : > { %307 = vst.msk [vmem:[#allocation2] sm:$0xff] %vm258_vm0, %v261_v10  ;;  %v238_v26 = vld [vmem:[%s2081_s24 + $0x60] sm:$0xff]  ;;  %308 = vst.msk [vmem:[#allocation2 + $0x8] sm:$0xff] %vm258_vm0, %v264_v15  ;;  %v272_v28 = vsel %vm258_vm0, %v236_v20, -inf  ;;  %v275_v29 = vsel %vm258_vm0, %v237_v21, -inf  ;;  %v239_v30 = vld [vmem:[%s2081_s24 + $0x68] sm:$0xff] }
  0x17   : > { %v240_v31 = vld [vmem:[%s2081_s24 + $0x70] sm:$0xff]  ;;  %v241_v32 = vld [vmem:[%s2081_s24 + $0x78] sm:$0xff]  ;;  %v277_v33 = vsel %vm258_vm0, %v238_v26, -inf  ;;  %v273_v34 = vmax.f32 %v271_v24, %v272_v28  ;;  %v276_v35 = vmax.f32 %v274_v25, %v275_v29  ;;  %309 = vst.msk [vmem:[#allocation2 + $0x10] sm:$0xff] %vm258_vm0, %v267_v22  ;;  %v280_v37 = vsel %vm258_vm0, %v239_v30, -inf  ;;  %v242_v38 = vld [vmem:[%s2081_s24 + $0x80] sm:$0xff] }
  0x18   : > { %v278_v36 = vsel %vm258_vm0, %v240_v31, -inf  ;;  %v243_v39 = vld [vmem:[%s2081_s24 + $0x88] sm:$0xff]  ;;  %v244_v40 = vld [vmem:[%s2081_s24 + $0x90] sm:$0xff]  ;;  %310 = vst.msk [vmem:[#allocation2 + $0x18] sm:$0xff] %vm258_vm0, %v270_v27  ;;  %v281_v42 = vsel %vm258_vm0, %v241_v32, -inf  ;;  %v245_v43 = vld [vmem:[%s2081_s24 + $0x98] sm:$0xff] }
  0x19   : > { %v279_v41 = vmax.f32 %v277_v33, %v278_v36  ;;  %v283_v44 = vsel %vm258_vm0, %v242_v38, -inf  ;;  %v284_v45 = vsel %vm258_vm0, %v244_v40, -inf  ;;  %v246_v46 = vld [vmem:[%s2081_s24 + $0xa0] sm:$0xff]  ;;  %v247_v47 = vld [vmem:[%s2081_s24 + $0xa8] sm:$0xff]  ;;  %311 = vst.msk [vmem:[#allocation2 + $0x20] sm:$0xff] %vm258_vm0, %v273_v34  ;;  %312 = vst.msk [vmem:[#allocation2 + $0x28] sm:$0xff] %vm258_vm0, %v276_v35  ;;  %v282_v48 = vmax.f32 %v280_v37, %v281_v42 }
  0x1a   : > { %v285_v49 = vmax.f32 %v283_v44, %v284_v45  ;;  %v286_v50 = vsel %vm258_vm0, %v243_v39, -inf  ;;  %v287_v51 = vsel %vm258_vm0, %v245_v43, -inf  ;;  %v248_v52 = vld [vmem:[%s2081_s24 + $0xb0] sm:$0xff]  ;;  %v249_v53 = vld [vmem:[%s2081_s24 + $0xb8] sm:$0xff]  ;;  %v250_v54 = vld [vmem:[%s2081_s24 + $0xc0] sm:$0xff]  ;;  %v289_v59 = vsel %vm258_vm0, %v246_v46, -inf }
  0x1b   : > { %313 = vst.msk [vmem:[#allocation2 + $0x30] sm:$0xff] %vm258_vm0, %v279_v41  ;;  %v288_v55 = vmax.f32 %v286_v50, %v287_v51  ;;  %v251_v56 = vld [vmem:[%s2081_s24 + $0xc8] sm:$0xff]  ;;  %v252_v57 = vld [vmem:[%s2081_s24 + $0xd0] sm:$0xff]  ;;  %v253_v58 = vld [vmem:[%s2081_s24 + $0xd8] sm:$0xff]  ;;  %v290_v60 = vsel %vm258_vm0, %v248_v52, -inf  ;;  %v292_v61 = vsel %vm258_vm0, %v247_v47, -inf }
  0x1c   : > { %314 = vst.msk [vmem:[#allocation2 + $0x38] sm:$0xff] %vm258_vm0, %v282_v48  ;;  %315 = vst.msk [vmem:[#allocation2 + $0x40] sm:$0xff] %vm258_vm0, %v285_v49  ;;  %v291_v62 = vmax.f32 %v289_v59, %v290_v60  ;;  %v293_v63 = vsel %vm258_vm0, %v249_v53, -inf  ;;  %v295_v1 = vsel %vm258_vm0, %v250_v54, -inf  ;;  %v296_v2 = vsel %vm258_vm0, %v252_v57, -inf  ;;  %v254_v3 = vld [vmem:[%s2081_s24 + $0xe0] sm:$0xff] }
  0x1d   : > { %v255_v4 = vld [vmem:[%s2081_s24 + $0xe8] sm:$0xff]  ;;  %v256_v5 = vld [vmem:[%s2081_s24 + $0xf0] sm:$0xff]  ;;  %316 = vst.msk [vmem:[#allocation2 + $0x48] sm:$0xff] %vm258_vm0, %v288_v55  ;;  %v294_v6 = vmax.f32 %v292_v61, %v293_v63  ;;  %v297_v7 = vmax.f32 %v295_v1, %v296_v2  ;;  %v298_v8 = vsel %vm258_vm0, %v251_v56, -inf  ;;  %v299_v9 = vsel %vm258_vm0, %v253_v58, -inf  ;;  %v257_v10 = vld [vmem:[%s2081_s24 + $0xf8] sm:$0xff] }
  0x1e   : > { %v344_v11 = vld [vmem:[#allocation2] ss:$2 sm:$0xff]  ;;  %v360_v12 = vld [vmem:[#allocation2 + $0x1] ss:$2 sm:$0xff]  ;;  %v300_v13 = vmax.f32 %v298_v8, %v299_v9  ;;  %317 = vst.msk [vmem:[#allocation2 + $0x50] sm:$0xff] %vm258_vm0, %v291_v62  ;;  %v301_v14 = vsel %vm258_vm0, %v254_v3, -inf }
  0x1f   : > { %v302_v15 = vsel %vm258_vm0, %v256_v5, -inf  ;;  %v375_v16 = vmax.f32 %v344_v11, %v360_v12  ;;  %318 = vst.msk [vmem:[#allocation2 + $0x58] sm:$0xff] %vm258_vm0, %v294_v6  ;;  %319 = vst.msk [vmem:[#allocation2 + $0x60] sm:$0xff] %vm258_vm0, %v297_v7  ;;  %v304_v18 = vsel %vm258_vm0, %v255_v4, -inf  ;;  %v305_v19 = vsel %vm258_vm0, %v257_v10, -inf  ;;  %v408_v32 = vld [vmem:[#allocation3 + $0x2] sm:$0xff] }
  0x20   : > { %v303_v17 = vmax.f32 %v301_v14, %v302_v15  ;;  %v346_v20 = vld [vmem:[#allocation2 + $0x10] ss:$2 sm:$0xff]  ;;  %v362_v21 = vld [vmem:[#allocation2 + $0x11] ss:$2 sm:$0xff]  ;;  %320 = vst.msk [vmem:[#allocation2 + $0x68] sm:$0xff] %vm258_vm0, %v300_v13  ;;  %v306_v22 = vmax.f32 %v304_v18, %v305_v19  ;;  %v400_v34 = vld [vmem:[#allocation3 + $0x1] sm:$0xff] }
  0x21   : > { %384 = vst.msk [vmem:[#allocation3 + $0x11] sm:$0xff] %vm258_vm0, %v375_v16  ;;  %v348_v23 = vld [vmem:[#allocation2 + $0x20] ss:$2 sm:$0xff]  ;;  %v364_v24 = vld [vmem:[#allocation2 + $0x21] ss:$2 sm:$0xff]  ;;  %v376_v25 = vmax.f32 %v346_v20, %v362_v21  ;;  %vm823_vm10 = vcmask 293888  }
  0x22   : > { %321 = vst.msk [vmem:[#allocation2 + $0x70] sm:$0xff] %vm258_vm0, %v303_v17  ;;  %v377_v26 = vmax.f32 %v348_v23, %v364_v24  ;;  %322 = vst.msk [vmem:[#allocation2 + $0x78] sm:$0xff] %vm258_vm0, %v306_v22  ;;  %v1962_v1 = vld [vmem:[%s2561_s1 + $0x10] ss:$0 sps:$4 sm:$0x33]   ;;  %v1963_v6 = vld [vmem:[%s2561_s1 + $0x8] sm:$0xff]  }
  0x23   : > { %913 = vst.msk [vmem:[#allocation4] sm:$0xff] %vm729_vm2, %v1978_v0  ;;  %916 = vst.msk [vmem:[#allocation4 + $0x10] sm:$0xff] %vm729_vm2, %v1978_v0  ;;  %v350_v27 = vld [vmem:[#allocation2 + $0x30] ss:$2 sm:$0xff]  ;;  %v366_v28 = vld [vmem:[#allocation2 + $0x31] ss:$2 sm:$0xff]  ;;  %1619 = vmatprep.subr.msk.bf16.mxu0 %vm836_vm3, %v1962_v1 }
  0x24   : > { %918 = vst.msk [vmem:[#allocation4 + $0x20] sm:$0xff] %vm729_vm2, %v1978_v0  ;;  %920 = vst.msk [vmem:[#allocation4 + $0x30] sm:$0xff] %vm729_vm2, %v1978_v0  ;;  %v378_v29 = vmax.f32 %v350_v27, %v366_v28  ;;  %v352_v30 = vld [vmem:[#allocation2 + $0x40] ss:$2 sm:$0xff]  ;;  %v368_v31 = vld [vmem:[#allocation2 + $0x41] ss:$2 sm:$0xff] }
  0x25   : > { %922 = vst.msk [vmem:[#allocation4 + $0x40] sm:$0xff] %vm729_vm2, %v1978_v0  ;;  %924 = vst.msk [vmem:[#allocation4 + $0x50] sm:$0xff] %vm729_vm2, %v1978_v0  ;;  %v379_v33 = vmax.f32 %v352_v30, %v368_v31  ;;  %v838_v4 = vsel %vm836_vm3, %v1962_v1, 0  ;;  %v1964_v10 = vld [vmem:[%s2561_s1] sm:$0xff]   ;;  %v448_v31 = vld [vmem:[#allocation3 + $0x90] sm:$0xff]  ;;  %vm914_vm11 = vcmask 58368  }
  0x26   : > { %926 = vst.msk [vmem:[#allocation4 + $0x60] sm:$0xff] %vm729_vm2, %v1978_v0  ;;  %928 = vst.msk [vmem:[#allocation4 + $0x70] sm:$0xff] %vm729_vm2, %v1978_v0  ;;  %v354_v35 = vld [vmem:[#allocation2 + $0x50] ss:$2 sm:$0xff]  ;;  %v370_v36 = vld [vmem:[#allocation2 + $0x51] ss:$2 sm:$0xff]  ;;  %1588 = vmatpush3.bf16.msra.mxu0 %v838_v4 }
  0x27   : > { %930 = vst.msk [vmem:[#allocation4 + $0x80] sm:$0xff] %vm729_vm2, %v1978_v0  ;;  %932 = vst.msk [vmem:[#allocation4 + $0x90] sm:$0xff] %vm729_vm2, %v1978_v0  ;;  %v356_v37 = vld [vmem:[#allocation2 + $0x60] ss:$2 sm:$0xff]  ;;  %v372_v38 = vld [vmem:[#allocation2 + $0x61] ss:$2 sm:$0xff]  ;;  %v380_v39 = vmax.f32 %v354_v35, %v370_v36  ;;  %1589 = vmatprep.subr.bf16.mxu0 %v1963_v6 }
  0x28   : > { %385 = vst.msk [vmem:[#allocation3 + $0x21] sm:$0xff] %vm258_vm0, %v376_v25  ;;  %386 = vst.msk [vmem:[#allocation3 + $0x31] sm:$0xff] %vm258_vm0, %v377_v26  ;;  %v409_v40 = vld [vmem:[#allocation3 + $0x12] sm:$0xff]  ;;  %v381_v42 = vmax.f32 %v356_v37, %v372_v38  ;;  %vm1400_vm12 = vcmask 1043456   ;;  %vm1304_vm13 = vcmask 326656   ;;  %vm1313_vm14 = vcmask 392192  }
  0x29   : > { %387 = vst.msk [vmem:[#allocation3 + $0x41] sm:$0xff] %vm258_vm0, %v378_v29  ;;  %388 = vst.msk [vmem:[#allocation3 + $0x51] sm:$0xff] %vm258_vm0, %v379_v33  ;;  %v401_v41 = vld [vmem:[#allocation3 + $0x11] sm:$0xff]  ;;  %v1652_v43 = vpack.i.bf16 %v409_v40, %v408_v32  ;;  %vm1322_vm15 = vcmask 457728   ;;  %vm1387_vm1 = vcmask 588800   ;;  %s1570_s9 = sshll.u32 %s2568_s19, 6 }
  0x2a   : > { %v1642_v44 = vpack.i.bf16 %v401_v41, %v400_v34  ;;  %389 = vst.msk [vmem:[#allocation3 + $0x61] sm:$0xff] %vm258_vm0, %v380_v39  ;;  %v358_v45 = vld [vmem:[#allocation2 + $0x70] ss:$2 sm:$0xff]  ;;  %v374_v46 = vld [vmem:[#allocation2 + $0x71] ss:$2 sm:$0xff]  ;;  %390 = vst.msk [vmem:[#allocation3 + $0x71] sm:$0xff] %vm258_vm0, %v381_v42  ;;  %1590 = vmatpush3.bf16.msra.mxu0 %v1963_v6 }
  0x2b   : > { %v382_v49 = vmax.f32 %v358_v45, %v374_v46  ;;  %1653 = vrot.lane.b32.xlu1 %v1652_v43, %s1979_s25  ;;  %v2194_v55 = vld [vmem:[#allocation3 + $0x10] sm:$0xff]  ;;  %1591 = vmatprep.subr.bf16.mxu0 %v1964_v10  ;;  %921 = vst.msk [vmem:[#allocation4 + $0x38] sm:$0x3] %vm914_vm11, %v1978_v0  ;;  %915 = vst.msk [vmem:[#allocation4 + $0x8] sm:$0x3] %vm914_vm11, %v1978_v0 }
  0x2c   : > { %1643 = vrot.lane.b32.xlu0 %v1642_v44, %s1980_s26  ;;  %v456_v34 = vld [vmem:[#allocation3 + $0x91] sm:$0xff]  ;;  %917 = vst.msk [vmem:[#allocation4 + $0x18] sm:$0x3] %vm914_vm11, %v1978_v0  ;;  %919 = vst.msk [vmem:[#allocation4 + $0x28] sm:$0x3] %vm914_vm11, %v1978_v0 }
  0x2d   : > { %391 = vst.msk [vmem:[#allocation3 + $0x81] sm:$0xff] %vm258_vm0, %v382_v49  ;;  %v464_v36 = vld [vmem:[#allocation3 + $0x92] sm:$0xff] }
  0x2e   : > { %1592 = vmatpush3.bf16.msra.mxu0 %v1964_v10  ;;  %923 = vst.msk [vmem:[#allocation4 + $0x48] sm:$0x3] %vm914_vm11, %v1978_v0  ;;  %925 = vst.msk [vmem:[#allocation4 + $0x58] sm:$0x3] %vm914_vm11, %v1978_v0 }
  0x2f   : > { %v410_v47 = vld [vmem:[#allocation3 + $0x22] sm:$0xff]  ;;  %v411_v50 = vld [vmem:[#allocation3 + $0x32] sm:$0xff]  ;;  %927 = vst.msk [vmem:[#allocation4 + $0x68] sm:$0x3] %vm914_vm11, %v1978_v0  ;;  %929 = vst.msk [vmem:[#allocation4 + $0x78] sm:$0x3] %vm914_vm11, %v1978_v0 }
  0x30   : > { %v402_v48 = vld [vmem:[#allocation3 + $0x21] sm:$0xff]  ;;  %v403_v51 = vld [vmem:[#allocation3 + $0x31] sm:$0xff]  ;;  %v1657_v52 = vpack.i.bf16 %v411_v50, %v410_v47  ;;  %v1682_v3 = vpack.i.bf16 %v410_v47, %v409_v40  ;;  %931 = vst.msk [vmem:[#allocation4 + $0x88] sm:$0x3] %vm914_vm11, %v1978_v0  ;;  %933 = vst.msk [vmem:[#allocation4 + $0x98] sm:$0x3] %vm914_vm11, %v1978_v0 }
  0x31   : > { %v1647_v53 = vpack.i.bf16 %v403_v51, %v402_v48  ;;  %v2192_v54 = vld [vmem:[#allocation3 + $0x30] sm:$0xff]  ;;  %v2196_v56 = vld [vmem:[#allocation3 + $0x20] sm:$0xff]  ;;  %v1672_v62 = vpack.i.bf16 %v402_v48, %v401_v41 }
  0x32   : > { %v2199_v57 = vld [vmem:[#allocation3 + $0x40] sm:$0xff]  ;;  %1658 = vrot.lane.b32.xlu1 %v1657_v52, %s1979_s25  ;;  %v1662_v59 = vpack.i.bf16 %v2196_v56, %v2194_v55  ;;  %v2214_v5 = vld [vmem:[#allocation3 + $0x50] sm:$0xff]  ;;  %v1692_v8 = vpack.i.bf16 %v2192_v54, %v2196_v56 }
  0x33   : > { %1648 = vrot.lane.b32.xlu0 %v1647_v53, %s1980_s26  ;;  %v1667_v58 = vpack.i.bf16 %v2199_v57, %v2192_v54  ;;  %v427_v60 = vld [vmem:[#allocation3 + $0x41] sm:$0xff]  ;;  %v1697_v7 = vpack.i.bf16 %v2214_v5, %v2199_v57  ;;  %v452_v9 = vld [vmem:[#allocation3 + $0x51] sm:$0xff] }
  0x34   : > { %v1677_v61 = vpack.i.bf16 %v427_v60, %v403_v51  ;;  %v435_v63 = vld [vmem:[#allocation3 + $0x42] sm:$0xff]  ;;  %v1707_v11 = vpack.i.bf16 %v452_v9, %v427_v60  ;;  %v407_v13 = vld [vmem:[#allocation3 + $0x71] sm:$0xff] }
  0x35   : > { %v1687_v2 = vpack.i.bf16 %v435_v63, %v411_v50  ;;  %v406_v12 = vld [vmem:[#allocation3 + $0x61] sm:$0xff]  ;;  %v460_v14 = vld [vmem:[#allocation3 + $0x52] sm:$0xff] }
  0x36   : > { %1668 = vrot.lane.b32.xlu1 %v1667_v58, %s1981_s27  ;;  %v1727_v15 = vpack.i.bf16 %v407_v13, %v406_v12  ;;  %v1722_v16 = vpack.i.bf16 %v460_v14, %v435_v63  ;;  %v414_v17 = vld [vmem:[#allocation3 + $0x62] sm:$0xff]  ;;  %v415_v18 = vld [vmem:[#allocation3 + $0x72] sm:$0xff]  ;;  %v1752_v27 = vpack.i.bf16 %v406_v12, %v452_v9 }
  0x37   : > { %1663 = vrot.lane.b32.xlu0 %v1662_v59, %s1981_s27  ;;  %v1737_v19 = vpack.i.bf16 %v415_v18, %v414_v17  ;;  %v2236_v20 = vld [vmem:[#allocation3 + $0x70] sm:$0xff]  ;;  %v423_v21 = vld [vmem:[#allocation3 + $0x80] sm:$0xff]  ;;  %v1762_v30 = vpack.i.bf16 %v414_v17, %v460_v14 }
  0x38   : > { %v2238_v22 = vld [vmem:[#allocation3 + $0x60] sm:$0xff]  ;;  %v1747_v23 = vpack.i.bf16 %v423_v21, %v2236_v20  ;;  %v1777_v32 = vpack.i.bf16 %v448_v31, %v423_v21 }
  0x39   : > { %v1742_v24 = vpack.i.bf16 %v2238_v22, %v2214_v5  ;;  %v431_v25 = vld [vmem:[#allocation3 + $0x81] sm:$0xff]  ;;  %v1772_v33 = vpack.i.bf16 %v2236_v20, %v2238_v22 }
  0x3a   : > { %1678 = vrot.lane.b32.xlu1 %v1677_v61, %s1982_s30  ;;  %v1757_v26 = vpack.i.bf16 %v431_v25, %v407_v13  ;;  %v439_v28 = vld [vmem:[#allocation3 + $0x82] sm:$0xff]  ;;  %v1787_v35 = vpack.i.bf16 %v456_v34, %v431_v25 }
  0x3b   : > { %1673 = vrot.lane.b32.xlu0 %v1672_v62, %s1982_s30  ;;  %v1767_v29 = vpack.i.bf16 %v439_v28, %v415_v18  ;;  %v1797_v37 = vpack.i.bf16 %v464_v36, %v439_v28  ;;  %v392_v48 = vld [vmem:[#allocation3] sm:$0xff] }
  0x3e   : > { %1688 = vrot.lane.b32.xlu1 %v1687_v2, %s1983_s8 }
  0x3f   : > { %1683 = vrot.lane.b32.xlu0 %v1682_v3, %s1983_s8 }
  0x42   : > { %1698 = vrot.lane.b32.xlu1 %v1697_v7, %s1984_s11 }
  0x43   : > { %1693 = vrot.lane.b32.xlu0 %v1692_v8, %s1984_s11 }
  0x46   : > { %1708 = vrot.lane.b32.xlu1 %v1707_v11, %s1985_s12 }
  0x47   : > { %1703 = vrot.lane.b32.xlu0 %v1647_v53, %s1985_s12 }
  0x4a   : > { %1718 = vrot.lane.b32.xlu1 %v1707_v11, %s1980_s26 }
  0x4b   : > { %1713 = vrot.lane.b32.xlu0 %v1657_v52, %s1986_s13 }
  0x4e   : > { %1728 = vrot.lane.b32.xlu1 %v1727_v15, %s1980_s26 }
  0x4f   : > { %1723 = vrot.lane.b32.xlu0 %v1722_v16, %s1986_s13 }
  0x52   : > { %1738 = vrot.lane.b32.xlu1 %v1737_v19, %s1979_s25 }
  0x53   : > { %1733 = vrot.lane.b32.xlu0 %v1722_v16, %s1979_s25 }
  0x56   : > { %1748 = vrot.lane.b32.xlu1 %v1747_v23, %s1981_s27 }
  0x57   : > { %1743 = vrot.lane.b32.xlu0 %v1742_v24, %s1981_s27 }
  0x5a   : > { %1758 = vrot.lane.b32.xlu1 %v1757_v26, %s1982_s30 }
  0x5b   : > { %1753 = vrot.lane.b32.xlu0 %v1752_v27, %s1982_s30 }
  0x5e   : > { %1768 = vrot.lane.b32.xlu1 %v1767_v29, %s1983_s8 }
  0x5f   : > { %1763 = vrot.lane.b32.xlu0 %v1762_v30, %s1983_s8  ;;  %s1990_s8 = smov 64  }
  0x62   : > { %1778 = vrot.lane.b32.xlu1 %v1777_v32, %s1984_s11 }
  0x63   : > { %1773 = vrot.lane.b32.xlu0 %v1772_v33, %s1984_s11 }
  0x66   : > { %1788 = vrot.lane.b32.xlu1 %v1787_v35, %s1985_s12 }
  0x67   : > { %1783 = vrot.lane.b32.xlu0 %v1727_v15, %s1985_s12  ;;  %s224_s12 = scalar_lea.vmem %s2565_s5, %s1570_s9 }
  0x6a   : > { %1798 = vrot.lane.b32.xlu1 %v1797_v37, %s1986_s13 }
  0x6b   : > { %1793 = vrot.lane.b32.xlu0 %v1737_v19, %s1986_s13 }
  0x9d   : > { %v1654_v38 = vpop.permute.xlu1 %1653 }
  0x9e   : > { %v1644_v39 = vpop.permute.xlu0 %1643  ;;  %v1656_v53 = vunpack.i.h.bf16 %v1654_v38  ;;  %v1655_v58 = vunpack.i.l.bf16 %v1654_v38 }
  0x9f   : > { %v1646_v46 = vunpack.i.h.bf16 %v1644_v39  ;;  %v1645_v47 = vunpack.i.l.bf16 %v1644_v39 }
  0xa1   : > { %v721_v59 = vsel %vm258_vm0, %v392_v48, %v1645_v47  ;;  %v722_v60 = vsel %vm258_vm0, %v2194_v55, %v1646_v46 }
  0xa2   : > { %v730_v9 = vsel %vm729_vm2, %v721_v59, %v1655_v58  ;;  %v731_v55 = vsel %vm729_vm2, %v722_v60, %v1656_v53 }
  0xa4   : > { %v1659_v40 = vpop.permute.xlu1 %1658 }
  0xa5   : > { %v1649_v41 = vpop.permute.xlu0 %1648  ;;  %v1661_v61 = vunpack.i.h.bf16 %v1659_v40  ;;  %v1660_v62 = vunpack.i.l.bf16 %v1659_v40 }
  0xa6   : > { %v1651_v49 = vunpack.i.h.bf16 %v1649_v41  ;;  %v1650_v50 = vunpack.i.l.bf16 %v1649_v41 }
  0xa8   : > { %v1669_v42 = vpop.permute.xlu1 %1668  ;;  %v724_v63 = vsel %vm258_vm0, %v2192_v54, %v1651_v49  ;;  %v723_v1 = vsel %vm258_vm0, %v2196_v56, %v1650_v50 }
  0xa9   : > { %v1664_v43 = vpop.permute.xlu0 %1663  ;;  %v1671_v2 = vunpack.i.h.bf16 %v1669_v42  ;;  %v1670_v3 = vunpack.i.l.bf16 %v1669_v42  ;;  %v732_v10 = vsel %vm729_vm2, %v723_v1, %v1660_v62  ;;  %v733_v54 = vsel %vm729_vm2, %v724_v63, %v1661_v61 }
  0xaa   : > { %v1666_v7 = vunpack.i.h.bf16 %v1664_v43  ;;  %v1665_v8 = vunpack.i.l.bf16 %v1664_v43 }
  0xab   : > { %v741_v12 = vsel %vm738_vm4, %v732_v10, %v1670_v3  ;;  %v742_v13 = vsel %vm738_vm4, %v733_v54, %v1671_v2 }
  0xac   : > { %v2259_v44 = vpop.permute.xlu1 %1678  ;;  %v739_v18 = vsel %vm738_vm4, %v730_v9, %v1665_v8  ;;  %v740_v19 = vsel %vm738_vm4, %v731_v55, %v1666_v7 }
  0xad   : > { %v1674_v45 = vpop.permute.xlu0 %1673  ;;  %v1681_v24 = vunpack.i.h.bf16 %v2259_v44  ;;  %v1680_v25 = vunpack.i.l.bf16 %v2259_v44 }
  0xae   : > { %v1676_v11 = vunpack.i.h.bf16 %v1674_v45  ;;  %v1675_v56 = vunpack.i.l.bf16 %v1674_v45 }
  0xaf   : > { %v750_v46 = vsel %vm747_vm5, %v741_v12, %v1680_v25  ;;  %v751_v47 = vsel %vm747_vm5, %v742_v13, %v1681_v24 }
  0xb0   : > { %v2261_v51 = vpop.permute.xlu1 %1688  ;;  %v748_v28 = vsel %vm747_vm5, %v739_v18, %v1675_v56  ;;  %v749_v29 = vsel %vm747_vm5, %v740_v19, %v1676_v11 }
  0xb1   : > { %v1684_v52 = vpop.permute.xlu0 %1683  ;;  %v1691_v30 = vunpack.i.h.bf16 %v2261_v51  ;;  %v1690_v31 = vunpack.i.l.bf16 %v2261_v51 }
  0xb2   : > { %v1686_v14 = vunpack.i.h.bf16 %v1684_v52  ;;  %v1685_v15 = vunpack.i.l.bf16 %v1684_v52 }
  0xb3   : > { %v759_v50 = vsel %vm756_vm6, %v750_v46, %v1690_v31  ;;  %v760_v51 = vsel %vm756_vm6, %v751_v47, %v1691_v30 }
  0xb4   : > { %v1699_v4 = vpop.permute.xlu1 %1698  ;;  %v757_v32 = vsel %vm756_vm6, %v748_v28, %v1685_v15  ;;  %v758_v33 = vsel %vm756_vm6, %v749_v29, %v1686_v14 }
  0xb5   : > { %v1694_v6 = vpop.permute.xlu0 %1693  ;;  %v1701_v34 = vunpack.i.h.bf16 %v1699_v4  ;;  %v1700_v35 = vunpack.i.l.bf16 %v1699_v4 }
  0xb6   : > { %v1696_v21 = vunpack.i.h.bf16 %v1694_v6  ;;  %v1695_v23 = vunpack.i.l.bf16 %v1694_v6 }
  0xb7   : > { %v768_v59 = vsel %vm765_vm7, %v759_v50, %v1700_v35  ;;  %v769_v60 = vsel %vm765_vm7, %v760_v51, %v1701_v34 }
  0xb8   : > { %v1709_v16 = vpop.permute.xlu1 %1708  ;;  %v766_v38 = vsel %vm765_vm7, %v757_v32, %v1695_v23  ;;  %v767_v39 = vsel %vm765_vm7, %v758_v33, %v1696_v21 }
  0xb9   : > { %v1704_v17 = vpop.permute.xlu0 %1703  ;;  %v1711_v42 = vunpack.i.h.bf16 %v1709_v16  ;;  %v1710_v43 = vunpack.i.l.bf16 %v1709_v16 }
  0xba   : > { %v1706_v26 = vunpack.i.h.bf16 %v1704_v17  ;;  %v1705_v27 = vunpack.i.l.bf16 %v1704_v17 }
  0xbb   : > { %v777_v63 = vsel %vm774_vm8, %v768_v59, %v1710_v43  ;;  %v778_v1 = vsel %vm774_vm8, %v769_v60, %v1711_v42 }
  0xbc   : > { %v1719_v36 = vpop.permute.xlu1 %1718  ;;  %v775_v44 = vsel %vm774_vm8, %v766_v38, %v1705_v27  ;;  %v776_v45 = vsel %vm774_vm8, %v767_v39, %v1706_v26 }
  0xbd   : > { %v1714_v37 = vpop.permute.xlu0 %1713  ;;  %v1721_v54 = vunpack.i.h.bf16 %v1719_v36  ;;  %v1720_v11 = vunpack.i.l.bf16 %v1719_v36 }
  0xbe   : > { %v1716_v40 = vunpack.i.h.bf16 %v1714_v37  ;;  %v1715_v41 = vunpack.i.l.bf16 %v1714_v37 }
  0xbf   : > { %v726_v25 = vsel %vm258_vm0, %v2214_v5, %v1721_v54  ;;  %v725_v26 = vsel %vm258_vm0, %v2199_v57, %v1720_v11 }
  0xc0   : > { %v784_v48 = vsel %vm783_vm9, %v775_v44, %v1715_v41  ;;  %v785_v49 = vsel %vm783_vm9, %v776_v45, %v1716_v40  ;;  %v1729_v52 = vpop.permute.xlu1 %1728 }
  0xc1   : > { %v1724_v53 = vpop.permute.xlu0 %1723  ;;  %v792_v58 = vpack.c.bf16 %v785_v49, %v784_v48  ;;  %v1731_v56 = vunpack.i.h.bf16 %v1729_v52  ;;  %v1730_v12 = vunpack.i.l.bf16 %v1729_v52 }
  0xc2   : > { %v1726_v61 = vunpack.i.h.bf16 %v1724_v53  ;;  %v1725_v62 = vunpack.i.l.bf16 %v1724_v53 }
  0xc3   : > { %1593 = vmatprep.mubr.msk.bf16.mxu0 %vm823_vm10, %v792_v58  ;;  %v728_v27 = vsel %vm258_vm0, %v2236_v20, %v1731_v56  ;;  %v727_v28 = vsel %vm258_vm0, %v2238_v22, %v1730_v12  ;;  %vm1331_vm0 = vcmask 523264  }
  0xc4   : > { %v786_v2 = vsel %vm783_vm9, %v777_v63, %v1725_v62  ;;  %v787_v3 = vsel %vm783_vm9, %v778_v1, %v1726_v61  ;;  %v1739_v6 = vpop.permute.xlu1 %1738 }
  0xc5   : > { %v793_v4 = vpack.c.bf16 %v787_v3, %v786_v2  ;;  %v1734_v7 = vpop.permute.xlu0 %1733  ;;  %v1741_v13 = vunpack.i.h.bf16 %v1739_v6  ;;  %v1740_v14 = vunpack.i.l.bf16 %v1739_v6 }
  0xc6   : > { %v1736_v15 = vunpack.i.h.bf16 %v1734_v7  ;;  %v1735_v16 = vunpack.i.l.bf16 %v1734_v7 }
  0xc7   : > { %1594 = vmatmul.mubr.msk.bf16.vlgmr.msra.gmra.mxu0 %vm823_vm10, %v793_v4  ;;  %v736_v29 = vsel %vm729_vm2, %v727_v28, %v1740_v14  ;;  %v737_v30 = vsel %vm729_vm2, %v728_v27, %v1741_v13 }
  0xc8   : > { %v1749_v8 = vpop.permute.xlu1 %1748  ;;  %v735_v31 = vsel %vm729_vm2, %v726_v25, %v1736_v15  ;;  %v734_v32 = vsel %vm729_vm2, %v725_v26, %v1735_v16 }
  0xc9   : > { %v1744_v9 = vpop.permute.xlu0 %1743  ;;  %v1751_v19 = vunpack.i.h.bf16 %v1749_v8  ;;  %v1750_v21 = vunpack.i.l.bf16 %v1749_v8 }
  0xca   : > { %v1746_v23 = vunpack.i.h.bf16 %v1744_v9  ;;  %v1745_v24 = vunpack.i.l.bf16 %v1744_v9 }
  0xcb   : > { %v745_v37 = vsel %vm738_vm4, %v736_v29, %v1750_v21  ;;  %v746_v20 = vsel %vm738_vm4, %v737_v30, %v1751_v19  ;;  %v2355_v21 = vld [vmem:[%s2562_s2] ss:$0 sm:$0xff] }
  0xcc   : > { %v1759_v55 = vpop.permute.xlu1 %1758  ;;  %v743_v22 = vsel %vm738_vm4, %v734_v32, %v1745_v24  ;;  %v744_v38 = vsel %vm738_vm4, %v735_v31, %v1746_v23 }
  0xcd   : > { %v1754_v10 = vpop.permute.xlu0 %1753  ;;  %v1761_v5 = vunpack.i.h.bf16 %v1759_v55  ;;  %v1760_v35 = vunpack.i.l.bf16 %v1759_v55 }
  0xce   : > { %v1756_v36 = vunpack.i.h.bf16 %v1754_v10  ;;  %v1755_v57 = vunpack.i.l.bf16 %v1754_v10 }
  0xcf   : > { %v754_v49 = vsel %vm747_vm5, %v745_v37, %v1760_v35  ;;  %v755_v50 = vsel %vm747_vm5, %v746_v20, %v1761_v5 }
  0xd0   : > { %v1769_v17 = vpop.permute.xlu1 %1768  ;;  %v752_v51 = vsel %vm747_vm5, %v743_v22, %v1755_v57  ;;  %v753_v52 = vsel %vm747_vm5, %v744_v38, %v1756_v36  ;;  %v959_v36 = vld [vmem:[#allocation4 + $0x2] sm:$0xff] }
  0xd1   : > { %v1764_v18 = vpop.permute.xlu0 %1763  ;;  %v1771_v39 = vunpack.i.h.bf16 %v1769_v17  ;;  %v1770_v40 = vunpack.i.l.bf16 %v1769_v17 }
  0xd2   : > { %v1766_v41 = vunpack.i.h.bf16 %v1764_v18  ;;  %v1765_v42 = vunpack.i.l.bf16 %v1764_v18 }
  0xd3   : > { %v763_v61 = vsel %vm756_vm6, %v754_v49, %v1770_v40  ;;  %v764_v62 = vsel %vm756_vm6, %v755_v50, %v1771_v39 }
  0xd4   : > { %v1779_v33 = vpop.permute.xlu1 %1778  ;;  %v761_v63 = vsel %vm756_vm6, %v752_v51, %v1765_v42  ;;  %v762_v1 = vsel %vm756_vm6, %v753_v52, %v1766_v41  ;;  %v1966_v51 = vld [vmem:[%s2563_s3 + $0x18] sm:$0xff]  }
  0xd5   : > { %v1774_v34 = vpop.permute.xlu0 %1773  ;;  %v1781_v43 = vunpack.i.h.bf16 %v1779_v33  ;;  %v1780_v44 = vunpack.i.l.bf16 %v1779_v33 }
  0xd6   : > { %v1776_v45 = vunpack.i.h.bf16 %v1774_v34  ;;  %v1775_v46 = vunpack.i.l.bf16 %v1774_v34  ;;  %v951_v34 = vld [vmem:[#allocation4 + $0x1] sm:$0xff] }
  0xd7   : > { %v772_v2 = vsel %vm765_vm7, %v763_v61, %v1780_v44  ;;  %v773_v3 = vsel %vm765_vm7, %v764_v62, %v1781_v43 }
  0xd8   : > { %v1789_v47 = vpop.permute.xlu1 %1788  ;;  %v770_v4 = vsel %vm765_vm7, %v761_v63, %v1775_v46  ;;  %v771_v6 = vsel %vm765_vm7, %v762_v1, %v1776_v45  ;;  %v1965_v45 = vld [vmem:[%s2563_s3 + $0x20] ss:$0 sps:$4 sm:$0xff]  }
  0xd9   : > { %v1784_v48 = vpop.permute.xlu0 %1783  ;;  %v1791_v53 = vunpack.i.h.bf16 %v1789_v47  ;;  %v1790_v58 = vunpack.i.l.bf16 %v1789_v47  ;;  %1620 = vmatprep.subr.msk.bf16.mxu1 %vm1400_vm12, %v1965_v45  ;;  %v1402_v49 = vsel %vm1400_vm12, %v1965_v45, 0 }
  0xda   : > { %v1786_v59 = vunpack.i.h.bf16 %v1784_v48  ;;  %v1785_v60 = vunpack.i.l.bf16 %v1784_v48  ;;  %1602 = vmatpush3.bf16.msra.mxu1 %v1402_v49 }
  0xdb   : > { %v781_v11 = vsel %vm774_vm8, %v772_v2, %v1790_v58  ;;  %v782_v56 = vsel %vm774_vm8, %v773_v3, %v1791_v53  ;;  %1603 = vmatprep.subr.bf16.mxu1 %v1966_v51  ;;  %v1967_v58 = vld [vmem:[%s2563_s3 + $0x10] sm:$0xff]  }
  0xdc   : > { %v1799_v7 = vpop.permute.xlu1 %1798  ;;  %v779_v12 = vsel %vm774_vm8, %v770_v4, %v1785_v60  ;;  %v780_v13 = vsel %vm774_vm8, %v771_v6, %v1786_v59 }
  0xdd   : > { %v1794_v8 = vpop.permute.xlu0 %1793  ;;  %v1801_v9 = vunpack.i.h.bf16 %v1799_v7  ;;  %v1800_v55 = vunpack.i.l.bf16 %v1799_v7 }
  0xde   : > { %v1796_v10 = vunpack.i.h.bf16 %v1794_v8  ;;  %v1795_v54 = vunpack.i.l.bf16 %v1794_v8  ;;  %1604 = vmatpush3.bf16.msra.mxu1 %v1966_v51  ;;  %v1968_v8 = vld [vmem:[%s2563_s3 + $0x8] sm:$0xff]  }
  0xdf   : > { %v790_v14 = vsel %vm783_vm9, %v781_v11, %v1800_v55  ;;  %v791_v15 = vsel %vm783_vm9, %v782_v56, %v1801_v9  ;;  %1605 = vmatprep.subr.bf16.mxu1 %v1967_v58  ;;  %v1969_v56 = vld [vmem:[%s2563_s3] sm:$0xff]  }
  0xe0   : > { %v788_v16 = vsel %vm783_vm9, %v779_v12, %v1795_v54  ;;  %v789_v17 = vsel %vm783_vm9, %v780_v13, %v1796_v10  ;;  %v795_v18 = vpack.c.bf16 %v791_v15, %v790_v14 }
  0xe1   : > { %v794_v19 = vpack.c.bf16 %v789_v17, %v788_v16 }
  0xe2   : > { %1606 = vmatpush3.bf16.msra.mxu1 %v1967_v58  ;;  %v943_v58 = vld [vmem:[#allocation4] sm:$0xff] }
  0xe3   : > { %1597 = vmatprep.mubr.msk.bf16.mxu0 %vm823_vm10, %v794_v19  ;;  %1607 = vmatprep.subr.bf16.mxu1 %v1968_v8 }
  0xe4   : > { %1598 = vmatmul.mubr.msk.bf16.gmra.mxu0 %vm823_vm10, %v795_v18 }
  0xe6   : > { %1608 = vmatpush3.bf16.msra.mxu1 %v1968_v8 }
  0xe7   : > { %1609 = vmatprep.subr.bf16.mxu1 %v1969_v56 }
  0xea   : > { %1610 = vmatpush3.bf16.msra.mxu1 %v1969_v56 }
 0x187   : > { %v1595_v23 = vpop.f32.mrf.mxu0 }
 0x188   : > { %v883_v24 = vadd.f32 %v1595_v23, %v2355_v21 }
 0x189   : > { %v874_v25 = vpop.f32.mrf.mxu0 }
 0x18a   : > { %v907_v26 = vmax.f32 %v883_v24, 0.0  ;;  %v875_v27 = vadd.f32 %v2355_v21, %v874_v25 }
 0x18b   : > { %v1596_v28 = vpop.f32.mrf.mxu0 }
 0x18c   : > { %937 = vst.msk [vmem:[#allocation4 + $0x31] sm:$0xff] %vm729_vm2, %v907_v26  ;;  %v905_v29 = vmax.f32 %v875_v27, 0.0  ;;  %v886_v30 = vadd.f32 %v1596_v28, %v2355_v21 }
 0x18d   : > { %v877_v31 = vpop.f32.mrf.mxu0 }
 0x18e   : > { %935 = vst.msk [vmem:[#allocation4 + $0x11] sm:$0xff] %vm729_vm2, %v905_v29  ;;  %v908_v0 = vmax.f32 %v886_v30, 0.0  ;;  %v878_v32 = vadd.f32 %v2355_v21, %v877_v31 }
 0x190   : > { %938 = vst.msk [vmem:[#allocation4 + $0x41] sm:$0xff] %vm729_vm2, %v908_v0  ;;  %v906_v33 = vmax.f32 %v878_v32, 0.0 }
 0x192   : > { %936 = vst.msk [vmem:[#allocation4 + $0x21] sm:$0xff] %vm729_vm2, %v906_v33 }
 0x193   : > { %v2365_v57 = vld [vmem:[#allocation4 + $0x30] sm:$0xff] }
 0x194   : > { %v977_v40 = vld [vmem:[#allocation4 + $0x31] sm:$0xff] }
 0x195   : > { %v952_v5 = vld [vmem:[#allocation4 + $0x11] sm:$0xff] }
 0x196   : > { %v1802_v35 = vpack.i.bf16 %v952_v5, %v951_v34  ;;  %v960_v20 = vld [vmem:[#allocation4 + $0x12] sm:$0xff] }
 0x197   : > { %v2367_v37 = vld [vmem:[#allocation4 + $0x40] sm:$0xff]  ;;  %v1807_v39 = vpack.i.bf16 %v960_v20, %v959_v36  ;;  %v2379_v43 = vld [vmem:[#allocation4 + $0x10] sm:$0xff] }
 0x198   : > { %1803 = vrot.lane.b32.xlu0 %v1802_v35, %s1979_s25  ;;  %v1812_v22 = vpack.i.bf16 %v2367_v37, %v2365_v57  ;;  %v2372_v38 = vld [vmem:[#allocation4 + $0x41] sm:$0xff]  ;;  %v985_v47 = vld [vmem:[#allocation4 + $0x32] sm:$0xff] }
 0x199   : > { %v2375_v41 = vld [vmem:[#allocation4 + $0x20] sm:$0xff]  ;;  %v1817_v42 = vpack.i.bf16 %v2372_v38, %v977_v40  ;;  %v999_v34 = vld [vmem:[#allocation4 + $0x90] sm:$0xff] }
 0x19a   : > { %1813 = vrot.lane.b32.xlu1 %v1812_v22, %s1984_s11  ;;  %v2381_v44 = vld [vmem:[#allocation4 + $0x42] sm:$0xff]  ;;  %v1837_v46 = vpack.i.bf16 %v2375_v41, %v2379_v43  ;;  %v1852_v55 = vpack.i.bf16 %v2365_v57, %v2375_v41  ;;  %v1007_v22 = vld [vmem:[#allocation4 + $0x91] sm:$0xff] }
 0x19b   : > { %v976_v48 = vld [vmem:[#allocation4 + $0x21] sm:$0xff]  ;;  %v1822_v50 = vpack.i.bf16 %v2381_v44, %v985_v47 }
 0x19c   : > { %1808 = vrot.lane.b32.xlu0 %v1807_v39, %s1982_s30  ;;  %v1842_v52 = vpack.i.bf16 %v976_v48, %v952_v5  ;;  %v984_v53 = vld [vmem:[#allocation4 + $0x22] sm:$0xff]  ;;  %v1827_v60 = vpack.i.bf16 %v977_v40, %v976_v48  ;;  %v1015_v39 = vld [vmem:[#allocation4 + $0x92] sm:$0xff] }
 0x19d   : > { %v1847_v63 = vpack.i.bf16 %v984_v53, %v960_v20  ;;  %v1832_v4 = vpack.i.bf16 %v985_v47, %v984_v53 }
 0x19e   : > { %1818 = vrot.lane.b32.xlu1 %v1817_v42, %s1986_s13 }
 0x1a0   : > { %1838 = vrot.lane.b32.xlu0 %v1837_v46, %s1984_s11 }
 0x1a2   : > { %1823 = vrot.lane.b32.xlu1 %v1822_v50, %s1987_s22 }
 0x1a4   : > { %v1599_v59 = vpop.f32.mrf.mxu0  ;;  %1843 = vrot.lane.b32.xlu0 %v1842_v52, %s1986_s13 }
 0x1a5   : > { %v899_v61 = vadd.f32 %v1599_v59, %v2355_v21 }
 0x1a6   : > { %v890_v62 = vpop.f32.mrf.mxu0  ;;  %1828 = vrot.lane.b32.xlu1 %v1827_v60, %s1979_s25 }
 0x1a7   : > { %v911_v1 = vmax.f32 %v899_v61, 0.0  ;;  %v891_v2 = vadd.f32 %v2355_v21, %v890_v62 }
 0x1a8   : > { %v1600_v3 = vpop.f32.mrf.mxu0  ;;  %1848 = vrot.lane.b32.xlu0 %v1847_v63, %s1987_s22 }
 0x1a9   : > { %941 = vst.msk [vmem:[#allocation4 + $0x71] sm:$0xff] %vm729_vm2, %v911_v1  ;;  %v909_v6 = vmax.f32 %v891_v2, 0.0  ;;  %v902_v7 = vadd.f32 %v1600_v3, %v2355_v21 }
 0x1aa   : > { %v893_v9 = vpop.f32.mrf.mxu0  ;;  %1833 = vrot.lane.b32.xlu1 %v1832_v4, %s1982_s30 }
 0x1ab   : > { %939 = vst.msk [vmem:[#allocation4 + $0x51] sm:$0xff] %vm729_vm2, %v909_v6  ;;  %v912_v10 = vmax.f32 %v902_v7, 0.0  ;;  %v894_v54 = vadd.f32 %v2355_v21, %v893_v9 }
 0x1ac   : > { %1853 = vrot.lane.b32.xlu0 %v1852_v55, %s1988_s28 }
 0x1ad   : > { %942 = vst.msk [vmem:[#allocation4 + $0x81] sm:$0xff] %vm729_vm2, %v912_v10  ;;  %v910_v11 = vmax.f32 %v894_v54, 0.0 }
 0x1af   : > { %940 = vst.msk [vmem:[#allocation4 + $0x61] sm:$0xff] %vm729_vm2, %v910_v11 }
 0x1b0   : > { %1858 = vrot.lane.b32.xlu0 %v1827_v60, %s1989_s7  ;;  %v2436_v23 = vld [vmem:[#allocation4 + $0x70] sm:$0xff] }
 0x1b1   : > { %v981_v28 = vld [vmem:[#allocation4 + $0x71] sm:$0xff] }
 0x1b2   : > { %v2420_v12 = vld [vmem:[#allocation4 + $0x50] sm:$0xff] }
 0x1b3   : > { %v1867_v13 = vpack.i.bf16 %v2420_v12, %v2367_v37  ;;  %v1011_v14 = vld [vmem:[#allocation4 + $0x52] sm:$0xff] }
 0x1b4   : > { %1863 = vrot.lane.b32.xlu0 %v1832_v4, %s1990_s8  ;;  %v1003_v15 = vld [vmem:[#allocation4 + $0x51] sm:$0xff]  ;;  %v1882_v16 = vpack.i.bf16 %v1011_v14, %v2381_v44  ;;  %v974_v19 = vld [vmem:[#allocation4 + $0x80] sm:$0xff] }
 0x1b5   : > { %1868 = vrot.lane.b32.xlu1 %v1867_v13, %s1988_s28  ;;  %v1872_v17 = vpack.i.bf16 %v1003_v15, %v2372_v38  ;;  %v1892_v24 = vpack.i.bf16 %v974_v19, %v2436_v23  ;;  %v982_v26 = vld [vmem:[#allocation4 + $0x81] sm:$0xff]  ;;  %v989_v32 = vld [vmem:[#allocation4 + $0x72] sm:$0xff]  ;;  %v1907_v35 = vpack.i.bf16 %v999_v34, %v974_v19 }
 0x1b6   : > { %v2430_v18 = vld [vmem:[#allocation4 + $0x60] sm:$0xff]  ;;  %v1897_v29 = vpack.i.bf16 %v982_v26, %v981_v28  ;;  %v1922_v38 = vpack.i.bf16 %v1007_v22, %v982_v26 }
 0x1b7   : > { %v1927_v21 = vpack.i.bf16 %v2430_v18, %v2420_v12  ;;  %v980_v25 = vld [vmem:[#allocation4 + $0x61] sm:$0xff]  ;;  %v1942_v5 = vpack.i.bf16 %v2436_v23, %v2430_v18 }
 0x1b8   : > { %1883 = vrot.lane.b32.xlu0 %v1882_v16, %s1990_s8  ;;  %v1932_v27 = vpack.i.bf16 %v980_v25, %v1003_v15  ;;  %v988_v30 = vld [vmem:[#allocation4 + $0x62] sm:$0xff]  ;;  %v1947_v36 = vpack.i.bf16 %v981_v28, %v980_v25 }
 0x1b9   : > { %1873 = vrot.lane.b32.xlu1 %v1872_v17, %s1989_s7  ;;  %v990_v31 = vld [vmem:[#allocation4 + $0x82] sm:$0xff]  ;;  %v1937_v0 = vpack.i.bf16 %v988_v30, %v1011_v14  ;;  %v1952_v20 = vpack.i.bf16 %v989_v32, %v988_v30 }
 0x1ba   : > { %v1902_v33 = vpack.i.bf16 %v990_v31, %v989_v32  ;;  %v1957_v40 = vpack.i.bf16 %v1015_v39, %v990_v31 }
 0x1bc   : > { %1888 = vrot.lane.b32.xlu0 %v1882_v16, %s1982_s30 }
 0x1bd   : > { %1878 = vrot.lane.b32.xlu1 %v1872_v17, %s1979_s25 }
 0x1c0   : > { %1928 = vrot.lane.b32.xlu0 %v1927_v21, %s1984_s11 }
 0x1c1   : > { %1893 = vrot.lane.b32.xlu1 %v1892_v24, %s1984_s11 }
 0x1c4   : > { %1933 = vrot.lane.b32.xlu0 %v1932_v27, %s1986_s13 }
 0x1c5   : > { %1898 = vrot.lane.b32.xlu1 %v1897_v29, %s1986_s13 }
 0x1c8   : > { %1938 = vrot.lane.b32.xlu0 %v1937_v0, %s1987_s22 }
 0x1c9   : > { %1903 = vrot.lane.b32.xlu1 %v1902_v33, %s1987_s22 }
 0x1cc   : > { %1943 = vrot.lane.b32.xlu0 %v1942_v5, %s1988_s28 }
 0x1cd   : > { %1908 = vrot.lane.b32.xlu1 %v1907_v35, %s1988_s28 }
 0x1d0   : > { %1948 = vrot.lane.b32.xlu0 %v1947_v36, %s1989_s7 }
 0x1d1   : > { %1913 = vrot.lane.b32.xlu1 %v1947_v36, %s1979_s25 }
 0x1d4   : > { %1953 = vrot.lane.b32.xlu0 %v1952_v20, %s1990_s8 }
 0x1d5   : > { %1918 = vrot.lane.b32.xlu1 %v1952_v20, %s1982_s30 }
 0x1d9   : > { %1923 = vrot.lane.b32.xlu1 %v1922_v38, %s1989_s7 }
 0x1dd   : > { %1958 = vrot.lane.b32.xlu1 %v1957_v40, %s1990_s8 }
 0x20a   : > { %v1804_v42 = vpop.permute.xlu0 %1803 }
 0x20b   : > { %v1806_v52 = vunpack.i.h.bf16 %v1804_v42  ;;  %v1805_v53 = vunpack.i.l.bf16 %v1804_v42 }
 0x20c   : > { %v1814_v44 = vpop.permute.xlu1 %1813 }
 0x20d   : > { %v1272_v2 = vsel %vm729_vm2, %v943_v58, %v1805_v53  ;;  %v1273_v3 = vsel %vm729_vm2, %v2379_v43, %v1806_v52  ;;  %v1816_v7 = vunpack.i.h.bf16 %v1814_v44  ;;  %v1815_v8 = vunpack.i.l.bf16 %v1814_v44 }
 0x20e   : > { %v1809_v45 = vpop.permute.xlu0 %1808 }
 0x20f   : > { %v1811_v4 = vunpack.i.h.bf16 %v1809_v45  ;;  %v1810_v6 = vunpack.i.l.bf16 %v1809_v45 }
 0x210   : > { %v1819_v46 = vpop.permute.xlu1 %1818 }
 0x211   : > { %v1280_v17 = vsel %vm747_vm5, %v1272_v2, %v1810_v6  ;;  %v1281_v19 = vsel %vm747_vm5, %v1273_v3, %v1811_v4  ;;  %v1821_v31 = vunpack.i.h.bf16 %v1819_v46  ;;  %v1820_v0 = vunpack.i.l.bf16 %v1819_v46 }
 0x212   : > { %v1839_v47 = vpop.permute.xlu0 %1838 }
 0x213   : > { %v1841_v9 = vunpack.i.h.bf16 %v1839_v47  ;;  %v1840_v55 = vunpack.i.l.bf16 %v1839_v47 }
 0x214   : > { %v2455_v48 = vpop.permute.xlu1 %1823 }
 0x215   : > { %v1288_v25 = vsel %vm765_vm7, %v1280_v17, %v1840_v55 }
 0x216   : > { %v1844_v49 = vpop.permute.xlu0 %1843 }
 0x217   : > { %v1846_v10 = vunpack.i.h.bf16 %v1844_v49  ;;  %v1845_v54 = vunpack.i.l.bf16 %v1844_v49  ;;  %v1826_v49 = vunpack.i.h.bf16 %v2455_v48 }
 0x218   : > { %v1829_v50 = vpop.permute.xlu1 %1828 }
 0x219   : > { %v1831_v60 = vunpack.i.h.bf16 %v1829_v50  ;;  %v1830_v61 = vunpack.i.l.bf16 %v1829_v50  ;;  %v1296_v27 = vsel %vm783_vm9, %v1288_v25, %v1845_v54  ;;  %v1825_v50 = vunpack.i.l.bf16 %v2455_v48 }
 0x21a   : > { %v1849_v51 = vpop.permute.xlu0 %1848 }
 0x21b   : > { %v1275_v11 = vsel %vm729_vm2, %v2365_v57, %v1831_v60  ;;  %v1274_v56 = vsel %vm729_vm2, %v2375_v41, %v1830_v61  ;;  %v1851_v13 = vunpack.i.h.bf16 %v1849_v51  ;;  %v1850_v14 = vunpack.i.l.bf16 %v1849_v51 }
 0x21c   : > { %v1834_v59 = vpop.permute.xlu1 %1833  ;;  %v1289_v57 = vsel %vm765_vm7, %v1281_v19, %v1841_v9 }
 0x21d   : > { %v1836_v62 = vunpack.i.h.bf16 %v1834_v59  ;;  %v1835_v63 = vunpack.i.l.bf16 %v1834_v59  ;;  %v1297_v28 = vsel %vm783_vm9, %v1289_v57, %v1846_v10  ;;  %v1305_v32 = vsel %vm1304_vm13, %v1296_v27, %v1850_v14 }
 0x21e   : > { %v1854_v1 = vpop.permute.xlu0 %1853  ;;  %v1306_v33 = vsel %vm1304_vm13, %v1297_v28, %v1851_v13 }
 0x21f   : > { %v1282_v15 = vsel %vm747_vm5, %v1274_v56, %v1835_v63  ;;  %v1283_v43 = vsel %vm747_vm5, %v1275_v11, %v1836_v62  ;;  %v1856_v21 = vunpack.i.h.bf16 %v1854_v1  ;;  %v1855_v24 = vunpack.i.l.bf16 %v1854_v1 }
 0x220   : > { %v1290_v29 = vsel %vm765_vm7, %v1282_v15, %v1815_v8  ;;  %v1291_v30 = vsel %vm765_vm7, %v1283_v43, %v1816_v7 }
 0x221   : > { %v1314_v5 = vsel %vm1313_vm14, %v1305_v32, %v1855_v24  ;;  %v1315_v35 = vsel %vm1313_vm14, %v1306_v33, %v1856_v21  ;;  %v1298_v38 = vsel %vm783_vm9, %v1290_v29, %v1820_v0  ;;  %v1299_v39 = vsel %vm783_vm9, %v1291_v30, %v1821_v31 }
 0x222   : > { %v1859_v16 = vpop.permute.xlu0 %1858  ;;  %v1307_v58 = vsel %vm1304_vm13, %v1298_v38, %v1825_v50  ;;  %v1308_v59 = vsel %vm1304_vm13, %v1299_v39, %v1826_v49 }
 0x223   : > { %v1861_v26 = vunpack.i.h.bf16 %v1859_v16  ;;  %v1860_v41 = vunpack.i.l.bf16 %v1859_v16 }
 0x225   : > { %v1323_v40 = vsel %vm1322_vm15, %v1314_v5, %v1860_v41  ;;  %v1324_v42 = vsel %vm1322_vm15, %v1315_v35, %v1861_v26 }
 0x226   : > { %v1864_v34 = vpop.permute.xlu0 %1863 }
 0x227   : > { %v1866_v36 = vunpack.i.h.bf16 %v1864_v34  ;;  %v1865_v20 = vunpack.i.l.bf16 %v1864_v34  ;;  %v1869_v22 = vpop.permute.xlu1 %1868 }
 0x228   : > { %v1871_v44 = vunpack.i.h.bf16 %v1869_v22  ;;  %v1870_v45 = vunpack.i.l.bf16 %v1869_v22 }
 0x229   : > { %v1332_v46 = vsel %vm1331_vm0, %v1323_v40, %v1865_v20  ;;  %v1333_v47 = vsel %vm1331_vm0, %v1324_v42, %v1866_v36 }
 0x22a   : > { %v1884_v51 = vpop.permute.xlu0 %1883  ;;  %v1340_v52 = vpack.c.bf16 %v1333_v47, %v1332_v46  ;;  %v1316_v62 = vsel %vm1313_vm14, %v1307_v58, %v1870_v45  ;;  %v1317_v63 = vsel %vm1313_vm14, %v1308_v59, %v1871_v44 }
 0x22b   : > { %v1874_v53 = vpop.permute.xlu1 %1873  ;;  %v1886_v1 = vunpack.i.h.bf16 %v1884_v51  ;;  %v1885_v2 = vunpack.i.l.bf16 %v1884_v51 }
 0x22c   : > { %v1876_v60 = vunpack.i.h.bf16 %v1874_v53  ;;  %v1875_v61 = vunpack.i.l.bf16 %v1874_v53  ;;  %1611 = vmatprep.mubr.msk.bf16.mxu1 %vm1387_vm1, %v1340_v52 }
 0x22e   : > { %v1325_v3 = vsel %vm1322_vm15, %v1316_v62, %v1875_v61  ;;  %v1326_v48 = vsel %vm1322_vm15, %v1317_v63, %v1876_v60  ;;  %v1889_v4 = vpop.permute.xlu0 %1888 }
 0x22f   : > { %v1879_v6 = vpop.permute.xlu1 %1878  ;;  %v1334_v7 = vsel %vm1331_vm0, %v1325_v3, %v1885_v2  ;;  %v1335_v8 = vsel %vm1331_vm0, %v1326_v48, %v1886_v1  ;;  %v1891_v19 = vunpack.i.h.bf16 %v1889_v4  ;;  %v1890_v21 = vunpack.i.l.bf16 %v1889_v4 }
 0x230   : > { %v1341_v9 = vpack.c.bf16 %v1335_v8, %v1334_v7  ;;  %v1881_v56 = vunpack.i.h.bf16 %v1879_v6  ;;  %v1880_v13 = vunpack.i.l.bf16 %v1879_v6 }
 0x232   : > { %v1929_v55 = vpop.permute.xlu0 %1928  ;;  %1612 = vmatmul.mubr.msk.bf16.vlgmr.msra.gmra.mxu1 %vm1387_vm1, %v1341_v9  ;;  %v1277_v43 = vsel %vm729_vm2, %v2420_v12, %v1881_v56  ;;  %v1276_v16 = vsel %vm729_vm2, %v2367_v37, %v1880_v13 }
 0x233   : > { %v1894_v10 = vpop.permute.xlu1 %1893  ;;  %v1931_v25 = vunpack.i.h.bf16 %v1929_v55  ;;  %v1930_v57 = vunpack.i.l.bf16 %v1929_v55  ;;  %v1284_v26 = vsel %vm747_vm5, %v1276_v16, %v1890_v21  ;;  %v1285_v41 = vsel %vm747_vm5, %v1277_v43, %v1891_v19 }
 0x234   : > { %v1896_v0 = vunpack.i.h.bf16 %v1894_v10  ;;  %v1895_v39 = vunpack.i.l.bf16 %v1894_v10 }
 0x235   : > { %v1292_v37 = vsel %vm765_vm7, %v1284_v26, %v1930_v57  ;;  %v1293_v34 = vsel %vm765_vm7, %v1285_v41, %v1931_v25  ;;  %v1557_v26 = vld [vmem:[%s2564_s4] ss:$0 sm:$0xff] }
 0x236   : > { %v1934_v54 = vpop.permute.xlu0 %1933 }
 0x237   : > { %v2496_v11 = vpop.permute.xlu1 %1898  ;;  %v1936_v27 = vunpack.i.h.bf16 %v1934_v54  ;;  %v1935_v28 = vunpack.i.l.bf16 %v1934_v54 }
 0x238   : > { %v1901_v40 = vunpack.i.h.bf16 %v2496_v11  ;;  %v1900_v1 = vunpack.i.l.bf16 %v2496_v11 }
 0x239   : > { %v1300_v36 = vsel %vm783_vm9, %v1292_v37, %v1935_v28  ;;  %v1301_v20 = vsel %vm783_vm9, %v1293_v34, %v1936_v27 }
 0x23a   : > { %v1939_v14 = vpop.permute.xlu0 %1938 }
 0x23b   : > { %v2498_v15 = vpop.permute.xlu1 %1903  ;;  %v1941_v29 = vunpack.i.h.bf16 %v1939_v14  ;;  %v1940_v30 = vunpack.i.l.bf16 %v1939_v14 }
 0x23c   : > { %v1906_v4 = vunpack.i.h.bf16 %v2498_v15  ;;  %v1905_v6 = vunpack.i.l.bf16 %v2498_v15 }
 0x23d   : > { %v1309_v42 = vsel %vm1304_vm13, %v1300_v36, %v1940_v30  ;;  %v1310_v44 = vsel %vm1304_vm13, %v1301_v20, %v1941_v29 }
 0x23e   : > { %v1944_v17 = vpop.permute.xlu0 %1943 }
 0x23f   : > { %v1909_v24 = vpop.permute.xlu1 %1908  ;;  %v1946_v12 = vunpack.i.h.bf16 %v1944_v17  ;;  %v1945_v32 = vunpack.i.l.bf16 %v1944_v17 }
 0x240   : > { %v1911_v8 = vunpack.i.h.bf16 %v1909_v24  ;;  %v1910_v9 = vunpack.i.l.bf16 %v1909_v24 }
 0x241   : > { %v1318_v46 = vsel %vm1313_vm14, %v1309_v42, %v1945_v32  ;;  %v1319_v47 = vsel %vm1313_vm14, %v1310_v44, %v1946_v12 }
 0x242   : > { %v1949_v31 = vpop.permute.xlu0 %1948 }
 0x243   : > { %v1914_v33 = vpop.permute.xlu1 %1913  ;;  %v1951_v5 = vunpack.i.h.bf16 %v1949_v31  ;;  %v1950_v35 = vunpack.i.l.bf16 %v1949_v31 }
 0x244   : > { %v1916_v22 = vunpack.i.h.bf16 %v1914_v33  ;;  %v1915_v38 = vunpack.i.l.bf16 %v1914_v33 }
 0x245   : > { %v1327_v52 = vsel %vm1322_vm15, %v1318_v46, %v1950_v35  ;;  %v1328_v53 = vsel %vm1322_vm15, %v1319_v47, %v1951_v5 }
 0x246   : > { %v1954_v45 = vpop.permute.xlu0 %1953  ;;  %v1279_v60 = vsel %vm729_vm2, %v2436_v23, %v1916_v22  ;;  %v1278_v61 = vsel %vm729_vm2, %v2430_v18, %v1915_v38 }
 0x247   : > { %v1956_v49 = vunpack.i.h.bf16 %v1954_v45  ;;  %v1955_v50 = vunpack.i.l.bf16 %v1954_v45  ;;  %v1919_v51 = vpop.permute.xlu1 %1918 }
 0x248   : > { %v1921_v58 = vunpack.i.h.bf16 %v1919_v51  ;;  %v1920_v59 = vunpack.i.l.bf16 %v1919_v51 }
 0x249   : > { %v1336_v62 = vsel %vm1331_vm0, %v1327_v52, %v1955_v50  ;;  %v1337_v63 = vsel %vm1331_vm0, %v1328_v53, %v1956_v49 }
 0x24a   : > { %v1342_v2 = vpack.c.bf16 %v1337_v63, %v1336_v62  ;;  %v1286_v3 = vsel %vm747_vm5, %v1278_v61, %v1920_v59  ;;  %v1287_v48 = vsel %vm747_vm5, %v1279_v60, %v1921_v58 }
 0x24b   : > { %v1294_v23 = vsel %vm765_vm7, %v1286_v3, %v1895_v39  ;;  %v1295_v7 = vsel %vm765_vm7, %v1287_v48, %v1896_v0  ;;  %v1924_v18 = vpop.permute.xlu1 %1923 }
 0x24c   : > { %v1302_v55 = vsel %vm783_vm9, %v1294_v23, %v1900_v1  ;;  %v1303_v10 = vsel %vm783_vm9, %v1295_v7, %v1901_v40  ;;  %1615 = vmatprep.mubr.msk.bf16.mxu1 %vm1387_vm1, %v1342_v2  ;;  %v1926_v54 = vunpack.i.h.bf16 %v1924_v18  ;;  %v1925_v11 = vunpack.i.l.bf16 %v1924_v18 }
 0x24d   : > { %v1311_v56 = vsel %vm1304_vm13, %v1302_v55, %v1905_v6  ;;  %v1312_v13 = vsel %vm1304_vm13, %v1303_v10, %v1906_v4 }
 0x24e   : > { %v1320_v14 = vsel %vm1313_vm14, %v1311_v56, %v1910_v9  ;;  %v1321_v15 = vsel %vm1313_vm14, %v1312_v13, %v1911_v8 }
 0x24f   : > { %v1959_v43 = vpop.permute.xlu1 %1958  ;;  %v1329_v19 = vsel %vm1322_vm15, %v1320_v14, %v1925_v11  ;;  %v1330_v21 = vsel %vm1322_vm15, %v1321_v15, %v1926_v54 }
 0x250   : > { %v1961_v16 = vunpack.i.h.bf16 %v1959_v43  ;;  %v1960_v17 = vunpack.i.l.bf16 %v1959_v43 }
 0x252   : > { %v1338_v24 = vsel %vm1331_vm0, %v1329_v19, %v1960_v17  ;;  %v1339_v25 = vsel %vm1331_vm0, %v1330_v21, %v1961_v16 }
 0x253   : > { %v1343_v57 = vpack.c.bf16 %v1339_v25, %v1338_v24 }
 0x255   : > { %1616 = vmatmul.mubr.msk.bf16.gmra.mxu1 %vm1387_vm1, %v1343_v57 }
 0x2f2   : > { %v1613_v41 = vpop.f32.mrf.mxu1 }
 0x2f3   : > { %v1447_v27 = vadd.f32 %v1613_v41, %v1557_v26 }
 0x2f4   : > { %v1438_v28 = vpop.f32.mrf.mxu1 }
 0x2f5   : > { %v1471_v29 = vmax.f32 %v1447_v27, 0.0  ;;  %v1439_v30 = vadd.f32 %v1557_v26, %v1438_v28 }
 0x2f6   : > { %v1614_v31 = vpop.f32.mrf.mxu1 }
 0x2f7   : > { %1479 = vst.msk [vmem:[%s224_s12 + $0x10] sm:$0xff] %vm729_vm2, %v1471_v29  ;;  %v1469_v0 = vmax.f32 %v1439_v30, 0.0  ;;  %v1450_v12 = vadd.f32 %v1614_v31, %v1557_v26 }
 0x2f8   : > { %v1441_v32 = vpop.f32.mrf.mxu1 }
 0x2f9   : > { %1477 = vst.msk [vmem:[%s224_s12] sm:$0xff] %vm729_vm2, %v1469_v0  ;;  %v1472_v33 = vmax.f32 %v1450_v12, 0.0  ;;  %v1442_v37 = vadd.f32 %v1557_v26, %v1441_v32 }
 0x2fb   : > { %1480 = vst.msk [vmem:[%s224_s12 + $0x18] sm:$0xff] %vm729_vm2, %v1472_v33  ;;  %v1470_v34 = vmax.f32 %v1442_v37, 0.0 }
 0x2fd   : > { %1478 = vst.msk [vmem:[%s224_s12 + $0x8] sm:$0xff] %vm729_vm2, %v1470_v34 }
 0x315   : > { %v1617_v5 = vpop.f32.mrf.mxu1 }
 0x316   : > { %v1463_v35 = vadd.f32 %v1617_v5, %v1557_v26 }
 0x317   : > { %v1454_v36 = vpop.f32.mrf.mxu1 }
 0x318   : > { %v1475_v20 = vmax.f32 %v1463_v35, 0.0  ;;  %v1455_v22 = vadd.f32 %v1557_v26, %v1454_v36 }
 0x319   : > { %v1618_v38 = vpop.f32.mrf.mxu1 }
 0x31a   : > { %1483 = vst.msk [vmem:[%s224_s12 + $0x30] sm:$0xff] %vm729_vm2, %v1475_v20  ;;  %v1473_v39 = vmax.f32 %v1455_v22, 0.0  ;;  %v1466_v40 = vadd.f32 %v1618_v38, %v1557_v26 }
 0x31b   : > { %v1457_v42 = vpop.f32.mrf.mxu1 }
 0x31c   : > { %1481 = vst.msk [vmem:[%s224_s12 + $0x20] sm:$0xff] %vm729_vm2, %v1473_v39  ;;  %v1476_v44 = vmax.f32 %v1466_v40, 0.0  ;;  %v1458_v45 = vadd.f32 %v1557_v26, %v1457_v42 }
 0x31e   : > { %1484 = vst.msk [vmem:[%s224_s12 + $0x38] sm:$0xff] %vm729_vm2, %v1476_v44  ;;  %v1474_v46 = vmax.f32 %v1458_v45, 0.0 }
 0x320   : > { %1482 = vst.msk [vmem:[%s224_s12 + $0x28] sm:$0xff] %vm729_vm2, %v1474_v46 }
 0x321 PF: > { %s15_s18 = sadd.s32 1, %s1976_s18  }
 0x322   : > { %p12_p4 = scmp.ge.s32.totalorder %s15_s18, 4  }
 0x324   :  { %14 = sbr.rel (!%p12_p4) target bundleno = 1 (0x1), region = 89 }

</bundles_post_ra>
